<compile_context>
chip_gen: v5e
topology: v5e:2x2
jax: 0.10.0
libtpu: 0.0.40
codegen_flags: <defaults>
</compile_context>

<pallas_src>
import jax
import jax.numpy as jnp
from jax.experimental import pallas as pl
from jax.experimental.pallas import tpu as pltpu

IN_FEATURES = 40 * 30          # 1200
HIDDEN = 512
OUT_FEATURES = 33

OUT_PAD = 128                  # 33 rounded up to 128 (lane-dense stores)
TILE_B = 512                   # batch tile: multiple of 8, fills the MXU rows


def mlp_kernel(x_ref, w1_ref, b1_ref, w2_ref, b2_ref, o_ref):
    # x_ref : (TILE_B, 1200)     w1_ref: (1200, HIDDEN)    b1_ref: (1, HIDDEN)
    # w2_ref: (HIDDEN, OUT_PAD)  b2_ref: (1, OUT_PAD)      o_ref : (TILE_B, OUT_PAD)
    h = jnp.dot(x_ref[...], w1_ref[...], preferred_element_type=jnp.float32)
    h = jnp.maximum(h + b1_ref[...], 0.0)
    o = jnp.dot(h, w2_ref[...], preferred_element_type=jnp.float32) + b2_ref[...]
    o_ref[...] = o.astype(o_ref.dtype)


def cnn_forward(x, w1, b1, w2, b2, tile_b=TILE_B):
    """Forward pass matching CNN.forward. `x` may be any shape whose elements
    flatten to (B, 1200), e.g. (B, 40, 30) or (B, 1, 40, 30).
    Weights are in (in_features, out_features) layout (transpose of PyTorch)."""
    x_flat = x.reshape(-1, IN_FEATURES).astype(jnp.float32)
    B = x_flat.shape[0]

    # Don't over-tile tiny batches: tile is a multiple of 8, at most `tile_b`.
    tb = min(tile_b, max(8, ((B + 7) // 8) * 8))
    n_blocks = pl.cdiv(B, tb)
    B_pad = n_blocks * tb

    # Pad only the batch dim (when needed) — no K-dim re-materialization.
    if B_pad != B:
        x_in = jnp.pad(x_flat, ((0, B_pad - B), (0, 0)))
    else:
        x_in = x_flat

    w1_f = w1.astype(jnp.float32).reshape(IN_FEATURES, HIDDEN)
    b1_f = b1.astype(jnp.float32).reshape(1, HIDDEN)
    # Zero-pad the tiny output projection to 128 lanes (one-time ~64 KiB copy).
    w2_pad = jnp.zeros((HIDDEN, OUT_PAD), jnp.float32).at[:, :OUT_FEATURES].set(
        w2.astype(jnp.float32).reshape(HIDDEN, OUT_FEATURES))
    b2_pad = jnp.zeros((1, OUT_PAD), jnp.float32).at[:, :OUT_FEATURES].set(
        b2.astype(jnp.float32).reshape(1, OUT_FEATURES))

    flops = 2 * B_pad * (IN_FEATURES * HIDDEN + HIDDEN * OUT_PAD)
    bytes_accessed = 4 * (
        B_pad * IN_FEATURES + IN_FEATURES * HIDDEN + HIDDEN
        + HIDDEN * OUT_PAD + OUT_PAD + B_pad * OUT_PAD)

    out_pad = pl.pallas_call(
        mlp_kernel,
        out_shape=jax.ShapeDtypeStruct((B_pad, OUT_PAD), jnp.float32),
        grid_spec=pltpu.PrefetchScalarGridSpec(
            num_scalar_prefetch=0,
            grid=(n_blocks,),
            in_specs=[
                pl.BlockSpec((tb, IN_FEATURES), lambda i: (i, 0)),     # x: tiled over B
                pl.BlockSpec((IN_FEATURES, HIDDEN), lambda i: (0, 0)),  # w1: resident
                pl.BlockSpec((1, HIDDEN), lambda i: (0, 0)),            # b1: resident
                pl.BlockSpec((HIDDEN, OUT_PAD), lambda i: (0, 0)),      # w2: resident
                pl.BlockSpec((1, OUT_PAD), lambda i: (0, 0)),           # b2: resident
            ],
            out_specs=pl.BlockSpec((tb, OUT_PAD), lambda i: (i, 0)),
        ),
        compiler_params=pltpu.CompilerParams(
            dimension_semantics=("parallel",),   # shard batch across TCs on v7x
        ),
        cost_estimate=pl.CostEstimate(
            flops=flops, transcendentals=0, bytes_accessed=bytes_accessed),
    )(x_in, w1_f, b1_f, w2_pad, b2_pad)

    return out_pad[:B, :OUT_FEATURES]


def init_params(key):
    """Deterministic init mimicking PyTorch nn.Linear default:
    U(-1/sqrt(fan_in), 1/sqrt(fan_in)). Weights stored as (in, out)."""
    k1, k2, k3, k4 = jax.random.split(key, 4)
    bound1 = 1.0 / jnp.sqrt(IN_FEATURES)
    bound2 = 1.0 / jnp.sqrt(HIDDEN)
    w1 = jax.random.uniform(k1, (IN_FEATURES, HIDDEN), jnp.float32, -bound1, bound1)
    b1 = jax.random.uniform(k2, (1, HIDDEN), jnp.float32, -bound1, bound1)
    w2 = jax.random.uniform(k3, (HIDDEN, OUT_FEATURES), jnp.float32, -bound2, bound2)
    b2 = jax.random.uniform(k4, (1, OUT_FEATURES), jnp.float32, -bound2, bound2)
    return w1, b1, w2, b2


if __name__ == "__main__":
    key = jax.random.PRNGKey(0)
    k_params, k_x = jax.random.split(key)
    w1, b1, w2, b2 = init_params(k_params)

    # Small batch of 40x30 inputs (consistent with x.view(-1, 40*30)).
    x = jax.random.normal(k_x, (2, 40, 30), dtype=jnp.float32)

    fwd = jax.jit(cnn_forward)
    out = fwd(x, w1, b1, w2, b2)
    out = jax.block_until_ready(out)

    # Pure-JAX reference check (same math, outside Pallas).
    ref = jnp.maximum(x.reshape(-1, IN_FEATURES) @ w1 + b1, 0.0) @ w2 + b2
    assert out.shape == (2, OUT_FEATURES)
    assert jnp.allclose(out, ref, atol=1e-4, rtol=1e-4)

    print("KERNEL_OK")
</pallas_src>

<mosaic_0001>
module attributes {stable_mosaic.version = 11 : i64} {
  func.func @mlp_kernel(%arg0: i32, %arg1: memref<8x1200xf32, #tpu.memory_space<vmem>>, %arg2: memref<1200x512xf32, #tpu.memory_space<vmem>>, %arg3: memref<1x512xf32, #tpu.memory_space<vmem>>, %arg4: memref<512x128xf32, #tpu.memory_space<vmem>>, %arg5: memref<1x128xf32, #tpu.memory_space<vmem>>, %arg6: memref<8x128xf32, #tpu.memory_space<vmem>>) attributes {dimension_semantics = [#tpu.dimension_semantics<parallel>], iteration_bounds = array<i64: 1>, scalar_prefetch = 0 : i64, scratch_operands = 0 : i64, tpu.core_type = #tpu.core_type<tc>, window_params = [{transform_indices = @transform_0, window_bounds = array<i64: 8, 1200>}, {pipeline_mode = #tpu.pipeline_mode<synchronous>, transform_indices = @transform_1, window_bounds = array<i64: 1200, 512>}, {pipeline_mode = #tpu.pipeline_mode<synchronous>, transform_indices = @transform_2, window_bounds = array<i64: 1, 512>}, {pipeline_mode = #tpu.pipeline_mode<synchronous>, transform_indices = @transform_3, window_bounds = array<i64: 512, 128>}, {pipeline_mode = #tpu.pipeline_mode<synchronous>, transform_indices = @transform_4, window_bounds = array<i64: 1, 128>}, {transform_indices = @transform_5, window_bounds = array<i64: 8, 128>}]} {
    %c0 = arith.constant 0 : index
    %c0_0 = arith.constant 0 : index
    %0 = vector.load %arg1[%c0, %c0_0] : memref<8x1200xf32, #tpu.memory_space<vmem>>, vector<8x1200xf32>
    %c0_1 = arith.constant 0 : index
    %c0_2 = arith.constant 0 : index
    %1 = vector.load %arg2[%c0_1, %c0_2] : memref<1200x512xf32, #tpu.memory_space<vmem>>, vector<1200x512xf32>
    %cst = arith.constant dense<0.000000e+00> : vector<8x512xf32>
    %2 = tpu.matmul %0, %1, %cst {dimension_numbers = #tpu.dot_dimension_numbers<[1], [0], [0], [1], [0, 0, 1, 1], [], []>} : vector<8x1200xf32>, vector<1200x512xf32>, vector<8x512xf32> -> vector<8x512xf32>
    %c0_3 = arith.constant 0 : index
    %c0_4 = arith.constant 0 : index
    %3 = vector.load %arg3[%c0_3, %c0_4] : memref<1x512xf32, #tpu.memory_space<vmem>>, vector<1x512xf32>
    %4 = vector.broadcast %3 : vector<1x512xf32> to vector<8x512xf32>
    %5 = arith.addf %2, %4 : vector<8x512xf32>
    %cst_5 = arith.constant 0.000000e+00 : f32
    %6 = vector.broadcast %cst_5 : f32 to vector<8x512xf32>
    %7 = arith.maximumf %5, %6 : vector<8x512xf32>
    %c0_6 = arith.constant 0 : index
    %c0_7 = arith.constant 0 : index
    %8 = vector.load %arg4[%c0_6, %c0_7] : memref<512x128xf32, #tpu.memory_space<vmem>>, vector<512x128xf32>
    %cst_8 = arith.constant dense<0.000000e+00> : vector<8x128xf32>
    %9 = tpu.matmul %7, %8, %cst_8 {dimension_numbers = #tpu.dot_dimension_numbers<[1], [0], [0], [1], [0, 0, 1, 1], [], []>} : vector<8x512xf32>, vector<512x128xf32>, vector<8x128xf32> -> vector<8x128xf32>
    %c0_9 = arith.constant 0 : index
    %c0_10 = arith.constant 0 : index
    %10 = vector.load %arg5[%c0_9, %c0_10] : memref<1x128xf32, #tpu.memory_space<vmem>>, vector<1x128xf32>
    %11 = vector.broadcast %10 : vector<1x128xf32> to vector<8x128xf32>
    %12 = arith.addf %9, %11 : vector<8x128xf32>
    %c0_11 = arith.constant 0 : index
    %c0_12 = arith.constant 0 : index
    %13 = vector.load %arg6[%c0_11, %c0_12] : memref<8x128xf32, #tpu.memory_space<vmem>>, vector<8x128xf32>
    tpu.vector_store %arg6[%c0_11, %c0_12], %12 {strides = array<i32>} : memref<8x128xf32, #tpu.memory_space<vmem>>, vector<8x128xf32>,
    return
  }
  func.func @transform_0(%arg0: i32) -> (i32, i32) {
    %c0_i32 = arith.constant 0 : i32
    %c0_i32_0 = arith.constant 0 : i32
    return %arg0, %c0_i32 : i32, i32
  }
  func.func @transform_1(%arg0: i32) -> (i32, i32) {
    %c0_i32 = arith.constant 0 : i32
    %c0_i32_0 = arith.constant 0 : i32
    %c0_i32_1 = arith.constant 0 : i32
    return %c0_i32, %c0_i32_0 : i32, i32
  }
  func.func @transform_2(%arg0: i32) -> (i32, i32) {
    %c0_i32 = arith.constant 0 : i32
    %c0_i32_0 = arith.constant 0 : i32
    %c0_i32_1 = arith.constant 0 : i32
    return %c0_i32, %c0_i32_0 : i32, i32
  }
  func.func @transform_3(%arg0: i32) -> (i32, i32) {
    %c0_i32 = arith.constant 0 : i32
    %c0_i32_0 = arith.constant 0 : i32
    %c0_i32_1 = arith.constant 0 : i32
    return %c0_i32, %c0_i32_0 : i32, i32
  }
  func.func @transform_4(%arg0: i32) -> (i32, i32) {
    %c0_i32 = arith.constant 0 : i32
    %c0_i32_0 = arith.constant 0 : i32
    %c0_i32_1 = arith.constant 0 : i32
    return %c0_i32, %c0_i32_0 : i32, i32
  }
  func.func @transform_5(%arg0: i32) -> (i32, i32) {
    %c0_i32 = arith.constant 0 : i32
    %c0_i32_0 = arith.constant 0 : i32
    return %arg0, %c0_i32 : i32, i32
  }
}

</mosaic_0001>

<bundles_post_ra>
// kernel: cnn_forward.1
= control target key start
LH: loop header
LB: loop body
LE: loop exit
PB: predicated region body
PF: predicated region fallthrough
CT: control target
= control target key end

     0   :  { %10 = vsyncpa [#allocation3], 0  ;;  %s2122_s0 = inlined_call_operand.vmem [shape: f32[8,1200], index: 0, kind: input, shape index: {}]   ;;  %s2123_s1 = inlined_call_operand.hbm [shape: f32[1200,512], index: 1, kind: input, shape index: {}]   ;;  %s2124_s2 = inlined_call_operand.hbm [shape: f32[1,512], index: 2, kind: input, shape index: {}]   ;;  %s2125_s3 = inlined_call_operand.vmem [shape: f32[512,128], index: 3, kind: input, shape index: {}]   ;;  %s2126_s4 = inlined_call_operand.vmem [shape: f32[1,128], index: 4, kind: input, shape index: {}]   ;;  %s2127_s5 = inlined_call_operand.vmem [shape: f32[8,128], index: 5, kind: output, shape index: {}]  }
   0x1   :  { %s18_s20 = sshll.u32 %s2123_s1, 4  ;;  %s19_s20 = int_to_ptr.hbm [resolvable:$true] %s18_s20 }
   0x2   :  { %11 = vsyncpa [#allocation5], 0  ;;  %s1704_s21 = smov [#allocation2]   ;;  %s32_s25 = sshll.u32 %s2124_s2, 4  ;;  %s33_s25 = int_to_ptr.hbm [resolvable:$true] %s32_s25 }
   0x3   :  { %s20_s22 = sshll.u32 %s1704_s21, 4  ;;  %s1705_s26 = smov 512   ;;  %s21_s22 = int_to_ptr.vmem [resolvable:$true] %s20_s22 }
   0x4   :  { %s1706_s27 = smov 32   ;;  %s1707_s28 = smov [#allocation4]  }
   0x5   :  { %26 = dma.hbm_to_vmem [thread:$0]  %s19_s20, 76800, %s21_s22, [#allocation3], %s1705_s26, %s1705_s26, %s1706_s27  }
   0x6   :  { %s34_s29 = sshll.u32 %s1707_s28, 4  ;;  %s35_s29 = int_to_ptr.vmem [resolvable:$true] %s34_s29 }
   0x7   :  { %37 = dma.hbm_to_vmem [thread:$0]  %s33_s25, 64, %s35_s29, [#allocation5]  }
   0x8   :  { %1700 = dma.done.wait [#allocation3], 76800  }
   0x9   :  { %1701 = vsyncadd [#allocation3], 4294890496 }
   0xa   :  { %1702 = dma.done.wait [#allocation5], 64  }
   0xb   :  { %1703 = vsyncadd [#allocation5], 4294967232  ;;  %v120_v0 = vld [vmem:[#allocation2 + $0x1e0] sm:$0xff]  ;;  %vm670_vm0 = vcmask 392192  }
   0xc   :  { %v248_v1 = vld [vmem:[#allocation2 + $0x5e0] sm:$0xff]  ;;  %674 = vmatpush.msra.mxu0 %v120_v0 }
   0xd   :  { %v116_v2 = vld [vmem:[#allocation2 + $0x1c0] sm:$0xff]  ;;  %714 = vmatpush.msra.mxu2 %v248_v1 }
   0xe   :  { %v244_v3 = vld [vmem:[#allocation2 + $0x5c0] sm:$0xff]  ;;  %675 = vmatpush.msra.mxu0 %v116_v2 }
   0xf   :  { %v112_v4 = vld [vmem:[#allocation2 + $0x1a0] sm:$0xff]  ;;  %715 = vmatpush.msra.mxu2 %v244_v3 }
  0x10   :  { %v240_v5 = vld [vmem:[#allocation2 + $0x5a0] sm:$0xff]  ;;  %676 = vmatpush.msra.mxu0 %v112_v4 }
  0x11   :  { %v312_v6 = vld [vmem:[#allocation2 + $0x7e0] sm:$0xff]  ;;  %716 = vmatpush.msra.mxu2 %v240_v5 }
  0x12   :  { %v308_v7 = vld [vmem:[#allocation2 + $0x7c0] sm:$0xff]  ;;  %734 = vmatpush.msra.mxu3 %v312_v6 }
  0x13   :  { %v184_v8 = vld [vmem:[#allocation2 + $0x3e0] sm:$0xff] }
  0x14   :  { %v108_v9 = vld [vmem:[#allocation2 + $0x180] sm:$0xff]  ;;  %694 = vmatpush.msra.mxu1 %v184_v8  ;;  %735 = vmatpush.msra.mxu3 %v308_v7 }
  0x15   :  { %v236_v10 = vld [vmem:[#allocation2 + $0x580] sm:$0xff]  ;;  %677 = vmatpush.msra.mxu0 %v108_v9 }
  0x16   :  { %v180_v11 = vld [vmem:[#allocation2 + $0x3c0] sm:$0xff]  ;;  %717 = vmatpush.msra.mxu2 %v236_v10 }
  0x17   :  { %v304_v12 = vld [vmem:[#allocation2 + $0x7a0] sm:$0xff]  ;;  %695 = vmatpush.msra.mxu1 %v180_v11 }
  0x18   :  { %v104_v13 = vld [vmem:[#allocation2 + $0x160] sm:$0xff]  ;;  %736 = vmatpush.msra.mxu3 %v304_v12 }
  0x19   :  { %v232_v14 = vld [vmem:[#allocation2 + $0x560] sm:$0xff]  ;;  %678 = vmatpush.msra.mxu0 %v104_v13 }
  0x1a   :  { %v176_v15 = vld [vmem:[#allocation2 + $0x3a0] sm:$0xff]  ;;  %718 = vmatpush.msra.mxu2 %v232_v14 }
  0x1b   :  { %v300_v16 = vld [vmem:[#allocation2 + $0x780] sm:$0xff]  ;;  %696 = vmatpush.msra.mxu1 %v176_v15 }
  0x1c   :  { %v172_v17 = vld [vmem:[#allocation2 + $0x380] sm:$0xff]  ;;  %737 = vmatpush.msra.mxu3 %v300_v16 }
  0x1d   :  { %v100_v18 = vld [vmem:[#allocation2 + $0x140] sm:$0xff]  ;;  %697 = vmatpush.msra.mxu1 %v172_v17 }
  0x1e   :  { %v228_v19 = vld [vmem:[#allocation2 + $0x540] sm:$0xff]  ;;  %679 = vmatpush.msra.mxu0 %v100_v18 }
  0x1f   :  { %v296_v20 = vld [vmem:[#allocation2 + $0x760] sm:$0xff]  ;;  %719 = vmatpush.msra.mxu2 %v228_v19 }
  0x20   :  { %v168_v21 = vld [vmem:[#allocation2 + $0x360] sm:$0xff]  ;;  %738 = vmatpush.msra.mxu3 %v296_v20 }
  0x21   :  { %v96_v22 = vld [vmem:[#allocation2 + $0x120] sm:$0xff]  ;;  %698 = vmatpush.msra.mxu1 %v168_v21 }
  0x22   :  { %v224_v23 = vld [vmem:[#allocation2 + $0x520] sm:$0xff]  ;;  %680 = vmatpush.msra.mxu0 %v96_v22 }
  0x23   :  { %v292_v24 = vld [vmem:[#allocation2 + $0x740] sm:$0xff]  ;;  %720 = vmatpush.msra.mxu2 %v224_v23 }
  0x24   :  { %v164_v25 = vld [vmem:[#allocation2 + $0x340] sm:$0xff]  ;;  %739 = vmatpush.msra.mxu3 %v292_v24 }
  0x25   :  { %v92_v26 = vld [vmem:[#allocation2 + $0x100] sm:$0xff]  ;;  %699 = vmatpush.msra.mxu1 %v164_v25 }
  0x26   :  { %v220_v27 = vld [vmem:[#allocation2 + $0x500] sm:$0xff]  ;;  %681 = vmatpush.msra.mxu0 %v92_v26 }
  0x27   :  { %v288_v28 = vld [vmem:[#allocation2 + $0x720] sm:$0xff]  ;;  %721 = vmatpush.msra.mxu2 %v220_v27 }
  0x28   :  { %v160_v29 = vld [vmem:[#allocation2 + $0x320] sm:$0xff]  ;;  %740 = vmatpush.msra.mxu3 %v288_v28 }
  0x29   :  { %v88_v30 = vld [vmem:[#allocation2 + $0xe0] sm:$0xff]  ;;  %700 = vmatpush.msra.mxu1 %v160_v29 }
  0x2a   :  { %v216_v31 = vld [vmem:[#allocation2 + $0x4e0] sm:$0xff]  ;;  %682 = vmatpush.msra.mxu0 %v88_v30 }
  0x2b   :  { %v284_v32 = vld [vmem:[#allocation2 + $0x700] sm:$0xff]  ;;  %722 = vmatpush.msra.mxu2 %v216_v31 }
  0x2c   :  { %v156_v33 = vld [vmem:[#allocation2 + $0x300] sm:$0xff]  ;;  %741 = vmatpush.msra.mxu3 %v284_v32 }
  0x2d   :  { %v84_v34 = vld [vmem:[#allocation2 + $0xc0] sm:$0xff]  ;;  %701 = vmatpush.msra.mxu1 %v156_v33 }
  0x2e   :  { %v212_v35 = vld [vmem:[#allocation2 + $0x4c0] sm:$0xff]  ;;  %683 = vmatpush.msra.mxu0 %v84_v34 }
  0x2f   :  { %v280_v36 = vld [vmem:[#allocation2 + $0x6e0] sm:$0xff]  ;;  %723 = vmatpush.msra.mxu2 %v212_v35 }
  0x30   :  { %v152_v37 = vld [vmem:[#allocation2 + $0x2e0] sm:$0xff]  ;;  %742 = vmatpush.msra.mxu3 %v280_v36 }
  0x31   :  { %v80_v38 = vld [vmem:[#allocation2 + $0xa0] sm:$0xff]  ;;  %702 = vmatpush.msra.mxu1 %v152_v37 }
  0x32   :  { %v208_v39 = vld [vmem:[#allocation2 + $0x4a0] sm:$0xff]  ;;  %684 = vmatpush.msra.mxu0 %v80_v38 }
  0x33   :  { %v276_v40 = vld [vmem:[#allocation2 + $0x6c0] sm:$0xff]  ;;  %724 = vmatpush.msra.mxu2 %v208_v39 }
  0x34   :  { %v148_v41 = vld [vmem:[#allocation2 + $0x2c0] sm:$0xff]  ;;  %743 = vmatpush.msra.mxu3 %v276_v40 }
  0x35   :  { %v76_v42 = vld [vmem:[#allocation2 + $0x80] sm:$0xff]  ;;  %703 = vmatpush.msra.mxu1 %v148_v41 }
  0x36   :  { %v204_v43 = vld [vmem:[#allocation2 + $0x480] sm:$0xff]  ;;  %685 = vmatpush.msra.mxu0 %v76_v42 }
  0x37   :  { %v272_v44 = vld [vmem:[#allocation2 + $0x6a0] sm:$0xff]  ;;  %725 = vmatpush.msra.mxu2 %v204_v43 }
  0x38   :  { %v144_v45 = vld [vmem:[#allocation2 + $0x2a0] sm:$0xff]  ;;  %744 = vmatpush.msra.mxu3 %v272_v44 }
  0x39   :  { %v72_v46 = vld [vmem:[#allocation2 + $0x60] sm:$0xff]  ;;  %704 = vmatpush.msra.mxu1 %v144_v45 }
  0x3a   :  { %v200_v47 = vld [vmem:[#allocation2 + $0x460] sm:$0xff]  ;;  %686 = vmatpush.msra.mxu0 %v72_v46 }
  0x3b   :  { %v268_v48 = vld [vmem:[#allocation2 + $0x680] sm:$0xff]  ;;  %726 = vmatpush.msra.mxu2 %v200_v47 }
  0x3c   :  { %v140_v49 = vld [vmem:[#allocation2 + $0x280] sm:$0xff]  ;;  %745 = vmatpush.msra.mxu3 %v268_v48 }
  0x3d   :  { %v68_v50 = vld [vmem:[#allocation2 + $0x40] sm:$0xff]  ;;  %705 = vmatpush.msra.mxu1 %v140_v49 }
  0x3e   :  { %v196_v51 = vld [vmem:[#allocation2 + $0x440] sm:$0xff]  ;;  %687 = vmatpush.msra.mxu0 %v68_v50 }
  0x3f   :  { %v264_v52 = vld [vmem:[#allocation2 + $0x660] sm:$0xff]  ;;  %727 = vmatpush.msra.mxu2 %v196_v51 }
  0x40   :  { %v136_v53 = vld [vmem:[#allocation2 + $0x260] sm:$0xff]  ;;  %746 = vmatpush.msra.mxu3 %v264_v52 }
  0x41   :  { %v64_v54 = vld [vmem:[#allocation2 + $0x20] sm:$0xff]  ;;  %706 = vmatpush.msra.mxu1 %v136_v53 }
  0x42   :  { %v192_v55 = vld [vmem:[#allocation2 + $0x420] sm:$0xff]  ;;  %688 = vmatpush.msra.mxu0 %v64_v54 }
  0x43   :  { %v260_v56 = vld [vmem:[#allocation2 + $0x640] sm:$0xff]  ;;  %728 = vmatpush.msra.mxu2 %v192_v55 }
  0x44   :  { %v132_v57 = vld [vmem:[#allocation2 + $0x240] sm:$0xff]  ;;  %747 = vmatpush.msra.mxu3 %v260_v56 }
  0x45   :  { %v60_v58 = vld [vmem:[#allocation2] sm:$0xff]  ;;  %707 = vmatpush.msra.mxu1 %v132_v57 }
  0x46   :  { %v188_v59 = vld [vmem:[#allocation2 + $0x400] sm:$0xff]  ;;  %689 = vmatpush.msra.mxu0 %v60_v58 }
  0x47   :  { %v376_v60 = vld [vmem:[#allocation2 + $0x9e0] sm:$0xff]  ;;  %729 = vmatpush.msra.mxu2 %v188_v59  ;;  %v1752_v59 = vld [vmem:[%s2122_s0 + $0x10] sm:$0xff] }
  0x48   :  { %v504_v61 = vld [vmem:[#allocation2 + $0xde0] sm:$0xff]  ;;  %754 = vmatpush.msrb.mxu0 %v376_v60  ;;  %730 = vmatmul.f32.vlgmr.msra.gmra.mxu2 %v1752_v59 }
  0x49   :  { %v256_v62 = vld [vmem:[#allocation2 + $0x620] sm:$0xff]  ;;  %794 = vmatpush.msrb.mxu2 %v504_v61 }
  0x4a   :  { %v128_v63 = vld [vmem:[#allocation2 + $0x220] sm:$0xff]  ;;  %748 = vmatpush.msra.mxu3 %v256_v62  ;;  %v121_v62 = vld [vmem:[#allocation2 + $0x1e8] sm:$0xff] }
  0x4b   :  { %v372_v0 = vld [vmem:[#allocation2 + $0x9c0] sm:$0xff]  ;;  %708 = vmatpush.msra.mxu1 %v128_v63 }
  0x4c   :  { %v500_v1 = vld [vmem:[#allocation2 + $0xdc0] sm:$0xff]  ;;  %755 = vmatpush.msrb.mxu0 %v372_v0  ;;  %v1759_v0 = vld [vmem:[%s2122_s0 + $0x18] sm:$0xff] }
  0x4d   :  { %v252_v2 = vld [vmem:[#allocation2 + $0x600] sm:$0xff]  ;;  %795 = vmatpush.msrb.mxu2 %v500_v1 }
  0x4e   :  { %v124_v3 = vld [vmem:[#allocation2 + $0x200] sm:$0xff]  ;;  %749 = vmatpush.msra.mxu3 %v252_v2 }
  0x4f   :  { %v368_v4 = vld [vmem:[#allocation2 + $0x9a0] sm:$0xff]  ;;  %709 = vmatpush.msra.mxu1 %v124_v3  ;;  %v117_v3 = vld [vmem:[#allocation2 + $0x1c8] sm:$0xff]  ;;  %750 = vmatmul.f32.vlgmr.msra.gmra.mxu3 %v1759_v0 }
  0x50   :  { %v496_v5 = vld [vmem:[#allocation2 + $0xda0] sm:$0xff]  ;;  %756 = vmatpush.msrb.mxu0 %v368_v4 }
  0x51   :  { %v568_v6 = vld [vmem:[#allocation2 + $0xfe0] sm:$0xff]  ;;  %796 = vmatpush.msrb.mxu2 %v496_v5  ;;  %v1764_v5 = vld [vmem:[%s2122_s0 + $0x8] sm:$0xff] }
  0x52   :  { %v440_v7 = vld [vmem:[#allocation2 + $0xbe0] sm:$0xff]  ;;  %814 = vmatpush.msrb.mxu3 %v568_v6  ;;  %710 = vmatmul.f32.vlgmr.msra.gmra.mxu1 %v1764_v5 }
  0x53   :  { %v364_v8 = vld [vmem:[#allocation2 + $0x980] sm:$0xff]  ;;  %774 = vmatpush.msrb.mxu1 %v440_v7 }
  0x54   :  { %v492_v9 = vld [vmem:[#allocation2 + $0xd80] sm:$0xff]  ;;  %757 = vmatpush.msrb.mxu0 %v364_v8  ;;  %v113_v8 = vld [vmem:[#allocation2 + $0x1a8] sm:$0xff] }
  0x55   :  { %v564_v10 = vld [vmem:[#allocation2 + $0xfc0] sm:$0xff]  ;;  %797 = vmatpush.msrb.mxu2 %v492_v9  ;;  %v185_v9 = vld [vmem:[#allocation2 + $0x3e8] sm:$0xff] }
  0x56   :  { %v436_v11 = vld [vmem:[#allocation2 + $0xbc0] sm:$0xff]  ;;  %815 = vmatpush.msrb.mxu3 %v564_v10 }
  0x57   :  { %v360_v12 = vld [vmem:[#allocation2 + $0x960] sm:$0xff]  ;;  %775 = vmatpush.msrb.mxu1 %v436_v11 }
  0x58   :  { %v488_v13 = vld [vmem:[#allocation2 + $0xd60] sm:$0xff]  ;;  %758 = vmatpush.msrb.mxu0 %v360_v12  ;;  %v109_v12 = vld [vmem:[#allocation2 + $0x188] sm:$0xff] }
  0x59   :  { %v560_v14 = vld [vmem:[#allocation2 + $0xfa0] sm:$0xff]  ;;  %798 = vmatpush.msrb.mxu2 %v488_v13  ;;  %v181_v13 = vld [vmem:[#allocation2 + $0x3c8] sm:$0xff] }
  0x5a   :  { %v432_v15 = vld [vmem:[#allocation2 + $0xba0] sm:$0xff]  ;;  %816 = vmatpush.msrb.mxu3 %v560_v14 }
  0x5b   :  { %v356_v16 = vld [vmem:[#allocation2 + $0x940] sm:$0xff]  ;;  %776 = vmatpush.msrb.mxu1 %v432_v15  ;;  %v1771_v15 = vld [vmem:[%s2122_s0 + $0x30] sm:$0xff] }
  0x5c   :  { %v484_v17 = vld [vmem:[#allocation2 + $0xd40] sm:$0xff]  ;;  %759 = vmatpush.msrb.mxu0 %v356_v16 }
  0x5d   :  { %v556_v18 = vld [vmem:[#allocation2 + $0xf80] sm:$0xff]  ;;  %799 = vmatpush.msrb.mxu2 %v484_v17  ;;  %v105_v17 = vld [vmem:[#allocation2 + $0x168] sm:$0xff] }
  0x5e   :  { %v428_v19 = vld [vmem:[#allocation2 + $0xb80] sm:$0xff]  ;;  %817 = vmatpush.msrb.mxu3 %v556_v18  ;;  %v177_v18 = vld [vmem:[#allocation2 + $0x3a8] sm:$0xff] }
  0x5f   :  { %v352_v20 = vld [vmem:[#allocation2 + $0x920] sm:$0xff]  ;;  %777 = vmatpush.msrb.mxu1 %v428_v19 }
  0x60   :  { %v480_v21 = vld [vmem:[#allocation2 + $0xd20] sm:$0xff]  ;;  %760 = vmatpush.msrb.mxu0 %v352_v20 }
  0x61   :  { %v552_v22 = vld [vmem:[#allocation2 + $0xf60] sm:$0xff]  ;;  %800 = vmatpush.msrb.mxu2 %v480_v21  ;;  %v1782_v21 = vld [vmem:[%s2122_s0 + $0x38] sm:$0xff] }
  0x62   :  { %v424_v23 = vld [vmem:[#allocation2 + $0xb60] sm:$0xff]  ;;  %818 = vmatpush.msrb.mxu3 %v552_v22 }
  0x63   :  { %v348_v24 = vld [vmem:[#allocation2 + $0x900] sm:$0xff]  ;;  %778 = vmatpush.msrb.mxu1 %v424_v23  ;;  %v101_v23 = vld [vmem:[#allocation2 + $0x148] sm:$0xff] }
  0x64   :  { %v476_v25 = vld [vmem:[#allocation2 + $0xd00] sm:$0xff]  ;;  %761 = vmatpush.msrb.mxu0 %v348_v24  ;;  %v173_v24 = vld [vmem:[#allocation2 + $0x388] sm:$0xff] }
  0x65   :  { %v548_v26 = vld [vmem:[#allocation2 + $0xf40] sm:$0xff]  ;;  %801 = vmatpush.msrb.mxu2 %v476_v25 }
  0x66   :  { %v420_v27 = vld [vmem:[#allocation2 + $0xb40] sm:$0xff]  ;;  %819 = vmatpush.msrb.mxu3 %v548_v26  ;;  %v1789_v26 = vld [vmem:[%s2122_s0 + $0x28] sm:$0xff] }
  0x67   :  { %v344_v28 = vld [vmem:[#allocation2 + $0x8e0] sm:$0xff]  ;;  %779 = vmatpush.msrb.mxu1 %v420_v27 }
  0x68   :  { %v472_v29 = vld [vmem:[#allocation2 + $0xce0] sm:$0xff]  ;;  %762 = vmatpush.msrb.mxu0 %v344_v28  ;;  %v97_v28 = vld [vmem:[#allocation2 + $0x128] sm:$0xff] }
  0x69   :  { %v544_v30 = vld [vmem:[#allocation2 + $0xf20] sm:$0xff]  ;;  %802 = vmatpush.msrb.mxu2 %v472_v29  ;;  %v169_v29 = vld [vmem:[#allocation2 + $0x368] sm:$0xff] }
  0x6a   :  { %v416_v31 = vld [vmem:[#allocation2 + $0xb20] sm:$0xff]  ;;  %820 = vmatpush.msrb.mxu3 %v544_v30 }
  0x6b   :  { %v340_v32 = vld [vmem:[#allocation2 + $0x8c0] sm:$0xff]  ;;  %780 = vmatpush.msrb.mxu1 %v416_v31 }
  0x6c   :  { %v468_v33 = vld [vmem:[#allocation2 + $0xcc0] sm:$0xff]  ;;  %763 = vmatpush.msrb.mxu0 %v340_v32  ;;  %v93_v32 = vld [vmem:[#allocation2 + $0x108] sm:$0xff] }
  0x6d   :  { %v540_v34 = vld [vmem:[#allocation2 + $0xf00] sm:$0xff]  ;;  %803 = vmatpush.msrb.mxu2 %v468_v33  ;;  %v165_v33 = vld [vmem:[#allocation2 + $0x348] sm:$0xff] }
  0x6e   :  { %v412_v35 = vld [vmem:[#allocation2 + $0xb00] sm:$0xff]  ;;  %821 = vmatpush.msrb.mxu3 %v540_v34 }
  0x6f   :  { %v336_v36 = vld [vmem:[#allocation2 + $0x8a0] sm:$0xff]  ;;  %781 = vmatpush.msrb.mxu1 %v412_v35 }
  0x70   :  { %v464_v37 = vld [vmem:[#allocation2 + $0xca0] sm:$0xff]  ;;  %764 = vmatpush.msrb.mxu0 %v336_v36  ;;  %v89_v36 = vld [vmem:[#allocation2 + $0xe8] sm:$0xff] }
  0x71   :  { %v536_v38 = vld [vmem:[#allocation2 + $0xee0] sm:$0xff]  ;;  %804 = vmatpush.msrb.mxu2 %v464_v37  ;;  %v161_v37 = vld [vmem:[#allocation2 + $0x328] sm:$0xff] }
  0x72   :  { %v408_v39 = vld [vmem:[#allocation2 + $0xae0] sm:$0xff]  ;;  %822 = vmatpush.msrb.mxu3 %v536_v38 }
  0x73   :  { %v332_v40 = vld [vmem:[#allocation2 + $0x880] sm:$0xff]  ;;  %782 = vmatpush.msrb.mxu1 %v408_v39 }
  0x74   :  { %v460_v41 = vld [vmem:[#allocation2 + $0xc80] sm:$0xff]  ;;  %765 = vmatpush.msrb.mxu0 %v332_v40  ;;  %v85_v40 = vld [vmem:[#allocation2 + $0xc8] sm:$0xff] }
  0x75   :  { %v532_v42 = vld [vmem:[#allocation2 + $0xec0] sm:$0xff]  ;;  %805 = vmatpush.msrb.mxu2 %v460_v41  ;;  %v157_v41 = vld [vmem:[#allocation2 + $0x308] sm:$0xff] }
  0x76   :  { %v404_v43 = vld [vmem:[#allocation2 + $0xac0] sm:$0xff]  ;;  %823 = vmatpush.msrb.mxu3 %v532_v42  ;;  %v249_v42 = vld [vmem:[#allocation2 + $0x5e8] sm:$0xff] }
  0x77   :  { %v328_v44 = vld [vmem:[#allocation2 + $0x860] sm:$0xff]  ;;  %783 = vmatpush.msrb.mxu1 %v404_v43 }
  0x78   :  { %v456_v45 = vld [vmem:[#allocation2 + $0xc60] sm:$0xff]  ;;  %766 = vmatpush.msrb.mxu0 %v328_v44  ;;  %v81_v44 = vld [vmem:[#allocation2 + $0xa8] sm:$0xff] }
  0x79   :  { %v528_v46 = vld [vmem:[#allocation2 + $0xea0] sm:$0xff]  ;;  %806 = vmatpush.msrb.mxu2 %v456_v45  ;;  %v153_v45 = vld [vmem:[#allocation2 + $0x2e8] sm:$0xff] }
  0x7a   :  { %v400_v47 = vld [vmem:[#allocation2 + $0xaa0] sm:$0xff]  ;;  %824 = vmatpush.msrb.mxu3 %v528_v46  ;;  %v245_v46 = vld [vmem:[#allocation2 + $0x5c8] sm:$0xff] }
  0x7b   :  { %v324_v48 = vld [vmem:[#allocation2 + $0x840] sm:$0xff]  ;;  %784 = vmatpush.msrb.mxu1 %v400_v47 }
  0x7c   :  { %v452_v49 = vld [vmem:[#allocation2 + $0xc40] sm:$0xff]  ;;  %767 = vmatpush.msrb.mxu0 %v324_v48  ;;  %v77_v48 = vld [vmem:[#allocation2 + $0x88] sm:$0xff] }
  0x7d   :  { %v524_v50 = vld [vmem:[#allocation2 + $0xe80] sm:$0xff]  ;;  %807 = vmatpush.msrb.mxu2 %v452_v49  ;;  %v149_v49 = vld [vmem:[#allocation2 + $0x2c8] sm:$0xff] }
  0x7e   :  { %v396_v51 = vld [vmem:[#allocation2 + $0xa80] sm:$0xff]  ;;  %825 = vmatpush.msrb.mxu3 %v524_v50  ;;  %v241_v50 = vld [vmem:[#allocation2 + $0x5a8] sm:$0xff] }
  0x7f   :  { %v320_v52 = vld [vmem:[#allocation2 + $0x820] sm:$0xff]  ;;  %785 = vmatpush.msrb.mxu1 %v396_v51 }
  0x80   :  { %v448_v53 = vld [vmem:[#allocation2 + $0xc20] sm:$0xff]  ;;  %768 = vmatpush.msrb.mxu0 %v320_v52  ;;  %v73_v52 = vld [vmem:[#allocation2 + $0x68] sm:$0xff] }
  0x81   :  { %v520_v54 = vld [vmem:[#allocation2 + $0xe60] sm:$0xff]  ;;  %808 = vmatpush.msrb.mxu2 %v448_v53  ;;  %v145_v53 = vld [vmem:[#allocation2 + $0x2a8] sm:$0xff] }
  0x82   :  { %v1747_v55 = vld [vmem:[%s2122_s0] sm:$0xff]  ;;  %826 = vmatpush.msrb.mxu3 %v520_v54  ;;  %v237_v54 = vld [vmem:[#allocation2 + $0x588] sm:$0xff] }
  0x83   :  { %v316_v56 = vld [vmem:[#allocation2 + $0x800] sm:$0xff]  ;;  %690 = vmatmul.f32.vlgmr.msra.gmra.mxu0 %v1747_v55 }
  0x84   :  { %v444_v57 = vld [vmem:[#allocation2 + $0xc00] sm:$0xff]  ;;  %769 = vmatpush.msrb.mxu0 %v316_v56 }
  0x85   :  { %v516_v58 = vld [vmem:[#allocation2 + $0xe40] sm:$0xff]  ;;  %809 = vmatpush.msrb.mxu2 %v444_v57  ;;  %v69_v57 = vld [vmem:[#allocation2 + $0x48] sm:$0xff] }
  0x86   :  { %v392_v60 = vld [vmem:[#allocation2 + $0xa60] sm:$0xff]  ;;  %827 = vmatpush.msrb.mxu3 %v516_v58  ;;  %810 = vmatmul.f32.vlgmr.msrb.gmra.mxu2 %v1771_v15  ;;  %v141_v58 = vld [vmem:[#allocation2 + $0x288] sm:$0xff] }
  0x87   :  { %v632_v61 = vld [vmem:[#allocation2 + $0x11e0] sm:$0xff]  ;;  %786 = vmatpush.msrb.mxu1 %v392_v60  ;;  %874 = vmatpush.msra.mxu2 %v121_v62  ;;  %v233_v60 = vld [vmem:[#allocation2 + $0x568] sm:$0xff] }
  0x88   :  { %v512_v63 = vld [vmem:[#allocation2 + $0xe20] sm:$0xff]  ;;  %834 = vmatpush.msra.mxu0 %v632_v61  ;;  %v65_v62 = vld [vmem:[#allocation2 + $0x28] sm:$0xff] }
  0x89   :  { %v388_v1 = vld [vmem:[#allocation2 + $0xa40] sm:$0xff]  ;;  %828 = vmatpush.msrb.mxu3 %v512_v63  ;;  %875 = vmatpush.msra.mxu2 %v117_v3  ;;  %v137_v63 = vld [vmem:[#allocation2 + $0x268] sm:$0xff] }
  0x8a   :  { %v628_v2 = vld [vmem:[#allocation2 + $0x11c0] sm:$0xff]  ;;  %787 = vmatpush.msrb.mxu1 %v388_v1  ;;  %v229_v1 = vld [vmem:[#allocation2 + $0x548] sm:$0xff] }
  0x8b   :  { %v508_v4 = vld [vmem:[#allocation2 + $0xe00] sm:$0xff]  ;;  %835 = vmatpush.msra.mxu0 %v628_v2  ;;  %876 = vmatpush.msra.mxu2 %v113_v8  ;;  %v61_v3 = vld [vmem:[#allocation2 + $0x8] sm:$0xff] }
  0x8c   :  { %v384_v6 = vld [vmem:[#allocation2 + $0xa20] sm:$0xff]  ;;  %829 = vmatpush.msrb.mxu3 %v508_v4  ;;  %v133_v4 = vld [vmem:[#allocation2 + $0x248] sm:$0xff] }
  0x8d   :  { %v624_v7 = vld [vmem:[#allocation2 + $0x11a0] sm:$0xff]  ;;  %788 = vmatpush.msrb.mxu1 %v384_v6  ;;  %877 = vmatpush.msra.mxu2 %v109_v12  ;;  %v225_v6 = vld [vmem:[#allocation2 + $0x528] sm:$0xff] }
  0x8e   :  { %v380_v10 = vld [vmem:[#allocation2 + $0xa00] sm:$0xff]  ;;  %836 = vmatpush.msra.mxu0 %v624_v7  ;;  %894 = vmatpush.msra.mxu3 %v185_v9  ;;  %v313_v8 = vld [vmem:[#allocation2 + $0x7e8] sm:$0xff] }
  0x8f   :  { %v620_v11 = vld [vmem:[#allocation2 + $0x1180] sm:$0xff]  ;;  %789 = vmatpush.msrb.mxu1 %v380_v10  ;;  %878 = vmatpush.msra.mxu2 %v105_v17  ;;  %v377_v9 = vld [vmem:[#allocation2 + $0x9e8] sm:$0xff] }
  0x90   :  { %v656_v14 = vld [vmem:[#allocation2 + $0x12a0] sm:$0xff]  ;;  %837 = vmatpush.msra.mxu0 %v620_v11  ;;  %895 = vmatpush.msra.mxu3 %v181_v13  ;;  %v129_v10 = vld [vmem:[#allocation2 + $0x228] sm:$0xff] }
  0x91   :  { %v616_v16 = vld [vmem:[#allocation2 + $0x1160] sm:$0xff]  ;;  %864 = vmatpush.msra.mxu1 %v656_v14  ;;  %830 = vmatmul.f32.vlgmr.msrb.gmra.mxu3 %v1782_v21  ;;  %v221_v11 = vld [vmem:[#allocation2 + $0x508] sm:$0xff] }
  0x92   :  { %v652_v19 = vld [vmem:[#allocation2 + $0x1280] sm:$0xff]  ;;  %838 = vmatpush.msra.mxu0 %v616_v16  ;;  %896 = vmatpush.msra.mxu3 %v177_v18  ;;  %v1801_v12 = vld [vmem:[%s2122_s0 + $0x48] sm:$0xff] }
  0x93   :  { %v1777_v20 = vld [vmem:[%s2122_s0 + $0x20] sm:$0xff]  ;;  %865 = vmatpush.msra.mxu1 %v652_v19  ;;  %879 = vmatpush.msra.mxu2 %v101_v23  ;;  %v309_v13 = vld [vmem:[#allocation2 + $0x7c8] sm:$0xff] }
  0x94   :  { %v612_v22 = vld [vmem:[#allocation2 + $0x1140] sm:$0xff]  ;;  %770 = vmatmul.f32.vlgmr.msrb.gmra.mxu0 %v1777_v20  ;;  %897 = vmatpush.msra.mxu3 %v173_v24  ;;  %v373_v14 = vld [vmem:[#allocation2 + $0x9c8] sm:$0xff] }
  0x95   :  { %v648_v25 = vld [vmem:[#allocation2 + $0x1260] sm:$0xff]  ;;  %839 = vmatpush.msra.mxu0 %v612_v22  ;;  %790 = vmatmul.f32.vlgmr.msrb.gmra.mxu1 %v1789_v26  ;;  %v125_v16 = vld [vmem:[#allocation2 + $0x208] sm:$0xff] }
  0x96   :  { %v608_v27 = vld [vmem:[#allocation2 + $0x1120] sm:$0xff]  ;;  %866 = vmatpush.msra.mxu1 %v648_v25  ;;  %880 = vmatpush.msra.mxu2 %v97_v28  ;;  %v217_v17 = vld [vmem:[#allocation2 + $0x4e8] sm:$0xff] }
  0x97   :  { %v644_v30 = vld [vmem:[#allocation2 + $0x1240] sm:$0xff]  ;;  %840 = vmatpush.msra.mxu0 %v608_v27  ;;  %898 = vmatpush.msra.mxu3 %v169_v29  ;;  %v305_v18 = vld [vmem:[#allocation2 + $0x7a8] sm:$0xff] }
  0x98   :  { %v604_v31 = vld [vmem:[#allocation2 + $0x1100] sm:$0xff]  ;;  %867 = vmatpush.msra.mxu1 %v644_v30  ;;  %881 = vmatpush.msra.mxu2 %v93_v32  ;;  %v369_v19 = vld [vmem:[#allocation2 + $0x9a8] sm:$0xff] }
  0x99   :  { %v640_v34 = vld [vmem:[#allocation2 + $0x1220] sm:$0xff]  ;;  %841 = vmatpush.msra.mxu0 %v604_v31  ;;  %899 = vmatpush.msra.mxu3 %v165_v33  ;;  %v441_v22 = vld [vmem:[#allocation2 + $0xbe8] sm:$0xff] }
  0x9a   :  { %v600_v35 = vld [vmem:[#allocation2 + $0x10e0] sm:$0xff]  ;;  %868 = vmatpush.msra.mxu1 %v640_v34  ;;  %882 = vmatpush.msra.mxu2 %v89_v36  ;;  %v213_v23 = vld [vmem:[#allocation2 + $0x4c8] sm:$0xff] }
  0x9b   :  { %v636_v38 = vld [vmem:[#allocation2 + $0x1200] sm:$0xff]  ;;  %842 = vmatpush.msra.mxu0 %v600_v35  ;;  %900 = vmatpush.msra.mxu3 %v161_v37  ;;  %v301_v24 = vld [vmem:[#allocation2 + $0x788] sm:$0xff] }
  0x9c   :  { %v596_v39 = vld [vmem:[#allocation2 + $0x10c0] sm:$0xff]  ;;  %869 = vmatpush.msra.mxu1 %v636_v38  ;;  %883 = vmatpush.msra.mxu2 %v85_v40  ;;  %v365_v25 = vld [vmem:[#allocation2 + $0x988] sm:$0xff] }
  0x9d   :  { %v592_v43 = vld [vmem:[#allocation2 + $0x10a0] sm:$0xff]  ;;  %843 = vmatpush.msra.mxu0 %v596_v39  ;;  %901 = vmatpush.msra.mxu3 %v157_v41  ;;  %v437_v27 = vld [vmem:[#allocation2 + $0xbc8] sm:$0xff] }
  0x9e   :  { %v588_v47 = vld [vmem:[#allocation2 + $0x1080] sm:$0xff]  ;;  %914 = vmatpush.msrb.mxu1 %v249_v42  ;;  %884 = vmatpush.msra.mxu2 %v81_v44  ;;  %v209_v28 = vld [vmem:[#allocation2 + $0x4a8] sm:$0xff] }
  0x9f   :  { %844 = vmatpush.msra.mxu0 %v592_v43  ;;  %902 = vmatpush.msra.mxu3 %v153_v45  ;;  %v584_v51 = vld [vmem:[#allocation2 + $0x1060] sm:$0xff]  ;;  %v297_v29 = vld [vmem:[#allocation2 + $0x768] sm:$0xff] }
  0xa0   :  { %915 = vmatpush.msrb.mxu1 %v245_v46  ;;  %885 = vmatpush.msra.mxu2 %v77_v48  ;;  %v580_v56 = vld [vmem:[#allocation2 + $0x1040] sm:$0xff]  ;;  %v361_v30 = vld [vmem:[#allocation2 + $0x968] sm:$0xff] }
  0xa1   :  { %845 = vmatpush.msra.mxu0 %v588_v47  ;;  %903 = vmatpush.msra.mxu3 %v149_v49  ;;  %v576_v61 = vld [vmem:[#allocation2 + $0x1020] sm:$0xff]  ;;  %v433_v31 = vld [vmem:[#allocation2 + $0xba8] sm:$0xff] }
  0xa2   :  { %916 = vmatpush.msrb.mxu1 %v241_v50  ;;  %886 = vmatpush.msra.mxu2 %v73_v52  ;;  %v572_v2 = vld [vmem:[#allocation2 + $0x1000] sm:$0xff]  ;;  %v205_v32 = vld [vmem:[#allocation2 + $0x488] sm:$0xff] }
  0xa3   :  { %846 = vmatpush.msra.mxu0 %v584_v51  ;;  %904 = vmatpush.msra.mxu3 %v145_v53  ;;  %v1795_v7 = vld [vmem:[%s2122_s0 + $0x40] sm:$0xff]  ;;  %v293_v33 = vld [vmem:[#allocation2 + $0x748] sm:$0xff] }
  0xa4   :  { %917 = vmatpush.msrb.mxu1 %v237_v54  ;;  %887 = vmatpush.msra.mxu2 %v69_v57  ;;  %v357_v34 = vld [vmem:[#allocation2 + $0x948] sm:$0xff] }
  0xa5   :  { %847 = vmatpush.msra.mxu0 %v580_v56  ;;  %905 = vmatpush.msra.mxu3 %v141_v58  ;;  %v429_v35 = vld [vmem:[#allocation2 + $0xb88] sm:$0xff] }
  0xa6   :  { %918 = vmatpush.msrb.mxu1 %v233_v60  ;;  %888 = vmatpush.msra.mxu2 %v65_v62  ;;  %v201_v36 = vld [vmem:[#allocation2 + $0x468] sm:$0xff] }
  0xa7   :  { %848 = vmatpush.msra.mxu0 %v576_v61  ;;  %906 = vmatpush.msra.mxu3 %v137_v63  ;;  %v289_v37 = vld [vmem:[#allocation2 + $0x728] sm:$0xff] }
  0xa8   :  { %919 = vmatpush.msrb.mxu1 %v229_v1  ;;  %889 = vmatpush.msra.mxu2 %v61_v3  ;;  %v353_v38 = vld [vmem:[#allocation2 + $0x928] sm:$0xff] }
  0xa9   :  { %849 = vmatpush.msra.mxu0 %v572_v2  ;;  %907 = vmatpush.msra.mxu3 %v133_v4  ;;  %v425_v39 = vld [vmem:[#allocation2 + $0xb68] sm:$0xff] }
  0xaa   :  { %920 = vmatpush.msrb.mxu1 %v225_v6  ;;  %850 = vmatmul.f32.vlgmr.msra.gmra.mxu0 %v1795_v7  ;;  %v197_v40 = vld [vmem:[#allocation2 + $0x448] sm:$0xff] }
  0xab   :  { %934 = vmatpush.msrb.mxu0 %v313_v8  ;;  %954 = vmatpush.msrb.mxu2 %v377_v9  ;;  %v285_v41 = vld [vmem:[#allocation2 + $0x708] sm:$0xff] }
  0xac   :  { %908 = vmatpush.msra.mxu3 %v129_v10  ;;  %921 = vmatpush.msrb.mxu1 %v221_v11  ;;  %v349_v42 = vld [vmem:[#allocation2 + $0x908] sm:$0xff] }
  0xad   :  { %1633 = vmatmul.msk.f32.vlgmr.msra.gmra.mxu1 %vm670_vm0, %v1801_v12  ;;  %935 = vmatpush.msrb.mxu0 %v309_v13  ;;  %v421_v43 = vld [vmem:[#allocation2 + $0xb48] sm:$0xff] }
  0xae   :  { %955 = vmatpush.msrb.mxu2 %v373_v14  ;;  %909 = vmatpush.msra.mxu3 %v125_v16  ;;  %v193_v44 = vld [vmem:[#allocation2 + $0x428] sm:$0xff] }
  0xaf   :  { %922 = vmatpush.msrb.mxu1 %v217_v17  ;;  %936 = vmatpush.msrb.mxu0 %v305_v18  ;;  %v281_v45 = vld [vmem:[#allocation2 + $0x6e8] sm:$0xff] }
  0xb0   :  { %956 = vmatpush.msrb.mxu2 %v369_v19  ;;  %974 = vmatpush.msrb.mxu3 %v441_v22  ;;  %v345_v46 = vld [vmem:[#allocation2 + $0x8e8] sm:$0xff] }
  0xb1   :  { %923 = vmatpush.msrb.mxu1 %v213_v23  ;;  %937 = vmatpush.msrb.mxu0 %v301_v24  ;;  %v417_v47 = vld [vmem:[#allocation2 + $0xb28] sm:$0xff] }
  0xb2   :  { %957 = vmatpush.msrb.mxu2 %v365_v25  ;;  %975 = vmatpush.msrb.mxu3 %v437_v27  ;;  %v189_v48 = vld [vmem:[#allocation2 + $0x408] sm:$0xff] }
  0xb3   :  { %924 = vmatpush.msrb.mxu1 %v209_v28  ;;  %938 = vmatpush.msrb.mxu0 %v297_v29  ;;  %v277_v49 = vld [vmem:[#allocation2 + $0x6c8] sm:$0xff] }
  0xb4   :  { %958 = vmatpush.msrb.mxu2 %v361_v30  ;;  %976 = vmatpush.msrb.mxu3 %v433_v31  ;;  %v341_v50 = vld [vmem:[#allocation2 + $0x8c8] sm:$0xff] }
  0xb5   :  { %925 = vmatpush.msrb.mxu1 %v205_v32  ;;  %939 = vmatpush.msrb.mxu0 %v293_v33  ;;  %v413_v51 = vld [vmem:[#allocation2 + $0xb08] sm:$0xff]  ;;  %v186_v33 = vld [vmem:[#allocation2 + $0x3f0] sm:$0xff] }
  0xb6   :  { %959 = vmatpush.msrb.mxu2 %v357_v34  ;;  %977 = vmatpush.msrb.mxu3 %v429_v35  ;;  %v505_v52 = vld [vmem:[#allocation2 + $0xde8] sm:$0xff] }
  0xb7   :  { %926 = vmatpush.msrb.mxu1 %v201_v36  ;;  %940 = vmatpush.msrb.mxu0 %v289_v37  ;;  %v273_v53 = vld [vmem:[#allocation2 + $0x6a8] sm:$0xff]  ;;  %v182_v36 = vld [vmem:[#allocation2 + $0x3d0] sm:$0xff] }
  0xb8   :  { %960 = vmatpush.msrb.mxu2 %v353_v38  ;;  %978 = vmatpush.msrb.mxu3 %v425_v39  ;;  %v337_v54 = vld [vmem:[#allocation2 + $0x8a8] sm:$0xff] }
  0xb9   :  { %927 = vmatpush.msrb.mxu1 %v197_v40  ;;  %941 = vmatpush.msrb.mxu0 %v285_v41  ;;  %v409_v56 = vld [vmem:[#allocation2 + $0xae8] sm:$0xff] }
  0xba   :  { %961 = vmatpush.msrb.mxu2 %v349_v42  ;;  %979 = vmatpush.msrb.mxu3 %v421_v43  ;;  %v501_v57 = vld [vmem:[#allocation2 + $0xdc8] sm:$0xff]  ;;  %v174_v43 = vld [vmem:[#allocation2 + $0x390] sm:$0xff] }
  0xbb   :  { %928 = vmatpush.msrb.mxu1 %v193_v44  ;;  %942 = vmatpush.msrb.mxu0 %v281_v45  ;;  %v269_v58 = vld [vmem:[#allocation2 + $0x688] sm:$0xff] }
  0xbc   :  { %962 = vmatpush.msrb.mxu2 %v345_v46  ;;  %980 = vmatpush.msrb.mxu3 %v417_v47  ;;  %v333_v60 = vld [vmem:[#allocation2 + $0x888] sm:$0xff]  ;;  %v170_v47 = vld [vmem:[#allocation2 + $0x370] sm:$0xff] }
  0xbd   :  { %929 = vmatpush.msrb.mxu1 %v189_v48  ;;  %943 = vmatpush.msrb.mxu0 %v277_v49  ;;  %v405_v61 = vld [vmem:[#allocation2 + $0xac8] sm:$0xff] }
  0xbe   :  { %963 = vmatpush.msrb.mxu2 %v341_v50  ;;  %981 = vmatpush.msrb.mxu3 %v413_v51  ;;  %v497_v62 = vld [vmem:[#allocation2 + $0xda8] sm:$0xff]  ;;  %v166_v50 = vld [vmem:[#allocation2 + $0x350] sm:$0xff] }
  0xbf   :  { %994 = vmatpush.msra.mxu1 %v505_v52  ;;  %944 = vmatpush.msrb.mxu0 %v273_v53  ;;  %v265_v63 = vld [vmem:[#allocation2 + $0x668] sm:$0xff]  ;;  %v162_v52 = vld [vmem:[#allocation2 + $0x330] sm:$0xff] }
  0xc0   :  { %964 = vmatpush.msrb.mxu2 %v337_v54  ;;  %982 = vmatpush.msrb.mxu3 %v409_v56  ;;  %v329_v1 = vld [vmem:[#allocation2 + $0x868] sm:$0xff] }
  0xc1   :  { %995 = vmatpush.msra.mxu1 %v501_v57  ;;  %945 = vmatpush.msrb.mxu0 %v269_v58  ;;  %v401_v2 = vld [vmem:[#allocation2 + $0xaa8] sm:$0xff]  ;;  %v122_v57 = vld [vmem:[#allocation2 + $0x1f0] sm:$0xff] }
  0xc2   :  { %965 = vmatpush.msrb.mxu2 %v333_v60  ;;  %983 = vmatpush.msrb.mxu3 %v405_v61  ;;  %v493_v3 = vld [vmem:[#allocation2 + $0xd88] sm:$0xff]  ;;  %v154_v61 = vld [vmem:[#allocation2 + $0x2f0] sm:$0xff] }
  0xc3   :  { %v261_v4 = vld [vmem:[#allocation2 + $0x648] sm:$0xff]  ;;  %996 = vmatpush.msra.mxu1 %v497_v62  ;;  %946 = vmatpush.msrb.mxu0 %v265_v63  ;;  %v118_v62 = vld [vmem:[#allocation2 + $0x1d0] sm:$0xff] }
  0xc4   :  { %v325_v6 = vld [vmem:[#allocation2 + $0x848] sm:$0xff]  ;;  %966 = vmatpush.msrb.mxu2 %v329_v1  ;;  %984 = vmatpush.msrb.mxu3 %v401_v2  ;;  %v150_v2 = vld [vmem:[#allocation2 + $0x2d0] sm:$0xff] }
  0xc5   :  { %v397_v8 = vld [vmem:[#allocation2 + $0xa88] sm:$0xff]  ;;  %997 = vmatpush.msra.mxu1 %v493_v3  ;;  %947 = vmatpush.msrb.mxu0 %v261_v4  ;;  %v114_v3 = vld [vmem:[#allocation2 + $0x1b0] sm:$0xff] }
  0xc6   :  { %v489_v9 = vld [vmem:[#allocation2 + $0xd68] sm:$0xff]  ;;  %967 = vmatpush.msrb.mxu2 %v325_v6  ;;  %985 = vmatpush.msrb.mxu3 %v397_v8  ;;  %v146_v8 = vld [vmem:[#allocation2 + $0x2b0] sm:$0xff] }
  0xc7   :  { %v257_v10 = vld [vmem:[#allocation2 + $0x628] sm:$0xff]  ;;  %998 = vmatpush.msra.mxu1 %v489_v9  ;;  %890 = vmatmul.f32.vlgmr.msra.gmra.mxu2 %v1747_v55  ;;  %v110_v9 = vld [vmem:[#allocation2 + $0x190] sm:$0xff] }
  0xc8   :  { %v321_v11 = vld [vmem:[#allocation2 + $0x828] sm:$0xff]  ;;  %948 = vmatpush.msrb.mxu0 %v257_v10  ;;  %910 = vmatmul.f32.vlgmr.msra.gmra.mxu3 %v1764_v5  ;;  %v178_v5 = vld [vmem:[#allocation2 + $0x3b0] sm:$0xff] }
  0xc9   :  { %v393_v13 = vld [vmem:[#allocation2 + $0xa68] sm:$0xff]  ;;  %968 = vmatpush.msrb.mxu2 %v321_v11  ;;  %930 = vmatmul.f32.vlgmr.msrb.gmra.mxu1 %v1752_v59  ;;  %v142_v11 = vld [vmem:[#allocation2 + $0x290] sm:$0xff] }
  0xca   :  { %v485_v14 = vld [vmem:[#allocation2 + $0xd48] sm:$0xff]  ;;  %986 = vmatpush.msrb.mxu3 %v393_v13  ;;  %v106_v13 = vld [vmem:[#allocation2 + $0x170] sm:$0xff] }
  0xcb   :  { %v253_v16 = vld [vmem:[#allocation2 + $0x608] sm:$0xff]  ;;  %999 = vmatpush.msra.mxu1 %v485_v14 }
  0xcc   :  { %v317_v17 = vld [vmem:[#allocation2 + $0x808] sm:$0xff]  ;;  %949 = vmatpush.msrb.mxu0 %v253_v16 }
  0xcd   :  { %v389_v18 = vld [vmem:[#allocation2 + $0xa48] sm:$0xff]  ;;  %969 = vmatpush.msrb.mxu2 %v317_v17  ;;  %950 = vmatmul.f32.vlgmr.msrb.gmra.mxu0 %v1759_v0  ;;  %v158_v0 = vld [vmem:[#allocation2 + $0x310] sm:$0xff] }
  0xce   :  { %v481_v19 = vld [vmem:[#allocation2 + $0xd28] sm:$0xff]  ;;  %987 = vmatpush.msrb.mxu3 %v389_v18  ;;  %v138_v17 = vld [vmem:[#allocation2 + $0x270] sm:$0xff] }
  0xcf   :  { %v569_v22 = vld [vmem:[#allocation2 + $0xfe8] sm:$0xff]  ;;  %1000 = vmatpush.msra.mxu1 %v481_v19  ;;  %970 = vmatmul.f32.vlgmr.msrb.gmra.mxu2 %v1777_v20  ;;  %v102_v18 = vld [vmem:[#allocation2 + $0x150] sm:$0xff] }
  0xd0   :  { %v633_v23 = vld [vmem:[#allocation2 + $0x11e8] sm:$0xff]  ;;  %1014 = vmatpush.msra.mxu0 %v569_v22 }
  0xd1   :  { %v385_v24 = vld [vmem:[#allocation2 + $0xa28] sm:$0xff]  ;;  %1034 = vmatpush.msra.mxu2 %v633_v23  ;;  %v134_v23 = vld [vmem:[#allocation2 + $0x250] sm:$0xff] }
  0xd2   :  { %v477_v25 = vld [vmem:[#allocation2 + $0xd08] sm:$0xff]  ;;  %988 = vmatpush.msrb.mxu3 %v385_v24  ;;  %v98_v24 = vld [vmem:[#allocation2 + $0x130] sm:$0xff] }
  0xd3   :  { %v565_v27 = vld [vmem:[#allocation2 + $0xfc8] sm:$0xff]  ;;  %1001 = vmatpush.msra.mxu1 %v477_v25 }
  0xd4   :  { %v629_v28 = vld [vmem:[#allocation2 + $0x11c8] sm:$0xff]  ;;  %1015 = vmatpush.msra.mxu0 %v565_v27  ;;  %v250_v27 = vld [vmem:[#allocation2 + $0x5f0] sm:$0xff] }
  0xd5   :  { %v381_v29 = vld [vmem:[#allocation2 + $0xa08] sm:$0xff]  ;;  %1035 = vmatpush.msra.mxu2 %v629_v28  ;;  %v130_v28 = vld [vmem:[#allocation2 + $0x230] sm:$0xff] }
  0xd6   :  { %v473_v30 = vld [vmem:[#allocation2 + $0xce8] sm:$0xff]  ;;  %989 = vmatpush.msrb.mxu3 %v381_v29  ;;  %v94_v29 = vld [vmem:[#allocation2 + $0x110] sm:$0xff] }
  0xd7   :  { %v561_v31 = vld [vmem:[#allocation2 + $0xfa8] sm:$0xff]  ;;  %1002 = vmatpush.msra.mxu1 %v473_v30  ;;  %990 = vmatmul.f32.vlgmr.msrb.gmra.mxu3 %v1789_v26 }
  0xd8   :  { %v625_v32 = vld [vmem:[#allocation2 + $0x11a8] sm:$0xff]  ;;  %1016 = vmatpush.msra.mxu0 %v561_v31  ;;  %1094 = vmatpush.msra.mxu3 %v186_v33  ;;  %v246_v31 = vld [vmem:[#allocation2 + $0x5d0] sm:$0xff] }
  0xd9   :  { %v469_v34 = vld [vmem:[#allocation2 + $0xcc8] sm:$0xff]  ;;  %1036 = vmatpush.msra.mxu2 %v625_v32  ;;  %v126_v32 = vld [vmem:[#allocation2 + $0x210] sm:$0xff] }
  0xda   :  { %v557_v35 = vld [vmem:[#allocation2 + $0xf88] sm:$0xff]  ;;  %1003 = vmatpush.msra.mxu1 %v469_v34  ;;  %1095 = vmatpush.msra.mxu3 %v182_v36  ;;  %v90_v33 = vld [vmem:[#allocation2 + $0xf0] sm:$0xff] }
  0xdb   :  { %v621_v55 = vld [vmem:[#allocation2 + $0x1188] sm:$0xff]  ;;  %1017 = vmatpush.msra.mxu0 %v557_v35  ;;  %v242_v35 = vld [vmem:[#allocation2 + $0x5b0] sm:$0xff] }
  0xdc   :  { %v465_v37 = vld [vmem:[#allocation2 + $0xca8] sm:$0xff]  ;;  %1037 = vmatpush.msra.mxu2 %v621_v55  ;;  %1096 = vmatpush.msra.mxu3 %v178_v5  ;;  %v442_v55 = vld [vmem:[#allocation2 + $0xbf0] sm:$0xff] }
  0xdd   :  { %v553_v38 = vld [vmem:[#allocation2 + $0xf68] sm:$0xff]  ;;  %1004 = vmatpush.msra.mxu1 %v465_v37  ;;  %v86_v36 = vld [vmem:[#allocation2 + $0xd0] sm:$0xff] }
  0xde   :  { %v617_v39 = vld [vmem:[#allocation2 + $0x1168] sm:$0xff]  ;;  %1018 = vmatpush.msra.mxu0 %v553_v38  ;;  %1097 = vmatpush.msra.mxu3 %v174_v43  ;;  %v238_v37 = vld [vmem:[#allocation2 + $0x590] sm:$0xff] }
  0xdf   :  { %v461_v40 = vld [vmem:[#allocation2 + $0xc88] sm:$0xff]  ;;  %1038 = vmatpush.msra.mxu2 %v617_v39  ;;  %v82_v38 = vld [vmem:[#allocation2 + $0xb0] sm:$0xff] }
  0xe0   :  { %v549_v41 = vld [vmem:[#allocation2 + $0xf48] sm:$0xff]  ;;  %1005 = vmatpush.msra.mxu1 %v461_v40  ;;  %1098 = vmatpush.msra.mxu3 %v170_v47  ;;  %v234_v5 = vld [vmem:[#allocation2 + $0x570] sm:$0xff] }
  0xe1   :  { %v613_v42 = vld [vmem:[#allocation2 + $0x1148] sm:$0xff]  ;;  %1019 = vmatpush.msra.mxu0 %v549_v41  ;;  %v434_v40 = vld [vmem:[#allocation2 + $0xbb0] sm:$0xff] }
  0xe2   :  { %v457_v44 = vld [vmem:[#allocation2 + $0xc68] sm:$0xff]  ;;  %1039 = vmatpush.msra.mxu2 %v613_v42  ;;  %1099 = vmatpush.msra.mxu3 %v166_v50  ;;  %v78_v41 = vld [vmem:[#allocation2 + $0x90] sm:$0xff] }
  0xe3   :  { %v609_v45 = vld [vmem:[#allocation2 + $0x1128] sm:$0xff]  ;;  %1006 = vmatpush.msra.mxu1 %v457_v44  ;;  %v230_v43 = vld [vmem:[#allocation2 + $0x550] sm:$0xff] }
  0xe4   :  { %v545_v46 = vld [vmem:[#allocation2 + $0xf28] sm:$0xff]  ;;  %1040 = vmatpush.msra.mxu2 %v609_v45  ;;  %1100 = vmatpush.msra.mxu3 %v162_v52  ;;  %v430_v44 = vld [vmem:[#allocation2 + $0xb90] sm:$0xff] }
  0xe5   :  { %v453_v20 = vld [vmem:[#allocation2 + $0xc48] sm:$0xff]  ;;  %1020 = vmatpush.msra.mxu0 %v545_v46  ;;  %v314_v45 = vld [vmem:[#allocation2 + $0x7f0] sm:$0xff] }
  0xe6   :  { %v605_v48 = vld [vmem:[#allocation2 + $0x1108] sm:$0xff]  ;;  %1007 = vmatpush.msra.mxu1 %v453_v20  ;;  %1101 = vmatpush.msra.mxu3 %v158_v0  ;;  %v74_v46 = vld [vmem:[#allocation2 + $0x70] sm:$0xff] }
  0xe7   :  { %v541_v49 = vld [vmem:[#allocation2 + $0xf08] sm:$0xff]  ;;  %1041 = vmatpush.msra.mxu2 %v605_v48  ;;  %v226_v47 = vld [vmem:[#allocation2 + $0x530] sm:$0xff] }
  0xe8   :  { %v449_v51 = vld [vmem:[#allocation2 + $0xc28] sm:$0xff]  ;;  %1021 = vmatpush.msra.mxu0 %v541_v49  ;;  %1102 = vmatpush.msra.mxu3 %v154_v61  ;;  %v426_v20 = vld [vmem:[#allocation2 + $0xb70] sm:$0xff] }
  0xe9   :  { %v601_v59 = vld [vmem:[#allocation2 + $0x10e8] sm:$0xff]  ;;  %1008 = vmatpush.msra.mxu1 %v449_v51  ;;  %v310_v48 = vld [vmem:[#allocation2 + $0x7d0] sm:$0xff] }
  0xea   :  { %v537_v26 = vld [vmem:[#allocation2 + $0xee8] sm:$0xff]  ;;  %1042 = vmatpush.msra.mxu2 %v601_v59  ;;  %1103 = vmatpush.msra.mxu3 %v150_v2  ;;  %v70_v49 = vld [vmem:[#allocation2 + $0x50] sm:$0xff] }
  0xeb   :  { %v445_v53 = vld [vmem:[#allocation2 + $0xc08] sm:$0xff]  ;;  %1022 = vmatpush.msra.mxu0 %v537_v26  ;;  %v222_v50 = vld [vmem:[#allocation2 + $0x510] sm:$0xff] }
  0xec   :  { %v597_v54 = vld [vmem:[#allocation2 + $0x10c8] sm:$0xff]  ;;  %1009 = vmatpush.msra.mxu1 %v445_v53  ;;  %1104 = vmatpush.msra.mxu3 %v146_v8  ;;  %v422_v51 = vld [vmem:[#allocation2 + $0xb50] sm:$0xff] }
  0xed   :  { %v533_v56 = vld [vmem:[#allocation2 + $0xec8] sm:$0xff]  ;;  %1043 = vmatpush.msra.mxu2 %v597_v54  ;;  %1010 = vmatmul.f32.vlgmr.msra.gmra.mxu1 %v1771_v15  ;;  %v306_v59 = vld [vmem:[#allocation2 + $0x7b0] sm:$0xff] }
  0xee   :  { %v529_v58 = vld [vmem:[#allocation2 + $0xea8] sm:$0xff]  ;;  %1023 = vmatpush.msra.mxu0 %v533_v56  ;;  %1074 = vmatpush.msrb.mxu1 %v122_v57  ;;  %v66_v26 = vld [vmem:[#allocation2 + $0x30] sm:$0xff] }
  0xef   :  { %v593_v60 = vld [vmem:[#allocation2 + $0x10a8] sm:$0xff]  ;;  %1105 = vmatpush.msra.mxu3 %v142_v11  ;;  %v218_v52 = vld [vmem:[#allocation2 + $0x4f0] sm:$0xff] }
  0xf0   :  { %v525_v63 = vld [vmem:[#allocation2 + $0xe88] sm:$0xff]  ;;  %1024 = vmatpush.msra.mxu0 %v529_v58  ;;  %1044 = vmatpush.msra.mxu2 %v593_v60  ;;  %v418_v53 = vld [vmem:[#allocation2 + $0xb30] sm:$0xff] }
  0xf1   :  { %v589_v1 = vld [vmem:[#allocation2 + $0x1088] sm:$0xff]  ;;  %1075 = vmatpush.msrb.mxu1 %v118_v62  ;;  %1106 = vmatpush.msra.mxu3 %v138_v17  ;;  %v302_v54 = vld [vmem:[#allocation2 + $0x790] sm:$0xff] }
  0xf2   :  { %v521_v4 = vld [vmem:[#allocation2 + $0xe68] sm:$0xff]  ;;  %1025 = vmatpush.msra.mxu0 %v525_v63  ;;  %1045 = vmatpush.msra.mxu2 %v589_v1  ;;  %v62_v56 = vld [vmem:[#allocation2 + $0x10] sm:$0xff] }
  0xf3   :  { %v585_v6 = vld [vmem:[#allocation2 + $0x1068] sm:$0xff]  ;;  %1076 = vmatpush.msrb.mxu1 %v114_v3  ;;  %1107 = vmatpush.msra.mxu3 %v134_v23  ;;  %v414_v0 = vld [vmem:[#allocation2 + $0xb10] sm:$0xff] }
  0xf4   :  { %v517_v15 = vld [vmem:[#allocation2 + $0xe48] sm:$0xff]  ;;  %1026 = vmatpush.msra.mxu0 %v521_v4  ;;  %1046 = vmatpush.msra.mxu2 %v585_v6  ;;  %v298_v57 = vld [vmem:[#allocation2 + $0x770] sm:$0xff] }
  0xf5   :  { %v581_v10 = vld [vmem:[#allocation2 + $0x1048] sm:$0xff]  ;;  %1077 = vmatpush.msrb.mxu1 %v110_v9  ;;  %1108 = vmatpush.msra.mxu3 %v130_v28  ;;  %v378_v58 = vld [vmem:[#allocation2 + $0x9f0] sm:$0xff] }
  0xf6   :  { %v513_v14 = vld [vmem:[#allocation2 + $0xe28] sm:$0xff]  ;;  %1027 = vmatpush.msra.mxu0 %v517_v15  ;;  %1047 = vmatpush.msra.mxu2 %v581_v10  ;;  %v210_v60 = vld [vmem:[#allocation2 + $0x4b0] sm:$0xff] }
  0xf7   :  { %v577_v16 = vld [vmem:[#allocation2 + $0x1028] sm:$0xff]  ;;  %1078 = vmatpush.msrb.mxu1 %v106_v13  ;;  %1109 = vmatpush.msra.mxu3 %v126_v32  ;;  %v410_v61 = vld [vmem:[#allocation2 + $0xaf0] sm:$0xff] }
  0xf8   :  { %v509_v19 = vld [vmem:[#allocation2 + $0xe08] sm:$0xff]  ;;  %1028 = vmatpush.msra.mxu0 %v513_v14  ;;  %1048 = vmatpush.msra.mxu2 %v577_v16  ;;  %v294_v62 = vld [vmem:[#allocation2 + $0x750] sm:$0xff] }
  0xf9   :  { %v573_v22 = vld [vmem:[#allocation2 + $0x1008] sm:$0xff]  ;;  %1079 = vmatpush.msrb.mxu1 %v102_v18  ;;  %1174 = vmatpush.msrb.mxu3 %v442_v55  ;;  %v374_v63 = vld [vmem:[#allocation2 + $0x9d0] sm:$0xff] }
  0xfa   :  { %1029 = vmatpush.msra.mxu0 %v509_v19  ;;  %1049 = vmatpush.msra.mxu2 %v573_v22  ;;  %v657_v25 = vld [vmem:[#allocation2 + $0x12a8] sm:$0xff]  ;;  %v206_v1 = vld [vmem:[#allocation2 + $0x490] sm:$0xff] }
  0xfb   :  { %1030 = vmatmul.f32.vlgmr.msra.gmra.mxu0 %v1782_v21  ;;  %1050 = vmatmul.f32.vlgmr.msra.gmra.mxu2 %v1795_v7  ;;  %v653_v30 = vld [vmem:[#allocation2 + $0x1288] sm:$0xff]  ;;  %v438_v7 = vld [vmem:[#allocation2 + $0xbd0] sm:$0xff] }
  0xfc   :  { %1080 = vmatpush.msrb.mxu1 %v98_v24  ;;  %1064 = vmatpush.msrb.mxu2 %v657_v25  ;;  %v649_v34 = vld [vmem:[#allocation2 + $0x1268] sm:$0xff]  ;;  %v406_v2 = vld [vmem:[#allocation2 + $0xad0] sm:$0xff] }
  0xfd   :  { %1114 = vmatpush.msrb.mxu0 %v250_v27  ;;  %v645_v21 = vld [vmem:[#allocation2 + $0x1248] sm:$0xff]  ;;  %1175 = vmatpush.msrb.mxu3 %v438_v7  ;;  %v290_v3 = vld [vmem:[#allocation2 + $0x730] sm:$0xff] }
  0xfe   :  { %1081 = vmatpush.msrb.mxu1 %v94_v29  ;;  %1065 = vmatpush.msrb.mxu2 %v653_v30  ;;  %v641_v39 = vld [vmem:[#allocation2 + $0x1228] sm:$0xff]  ;;  %v370_v4 = vld [vmem:[#allocation2 + $0x9b0] sm:$0xff] }
  0xff   :  { %1115 = vmatpush.msrb.mxu0 %v246_v31  ;;  %v637_v42 = vld [vmem:[#allocation2 + $0x1208] sm:$0xff]  ;;  %1176 = vmatpush.msrb.mxu3 %v434_v40  ;;  %v202_v6 = vld [vmem:[#allocation2 + $0x470] sm:$0xff] }
 0x100   :  { %1082 = vmatpush.msrb.mxu1 %v90_v33  ;;  %1066 = vmatpush.msrb.mxu2 %v649_v34  ;;  %v402_v8 = vld [vmem:[#allocation2 + $0xab0] sm:$0xff] }
 0x101   :  { %1116 = vmatpush.msrb.mxu0 %v242_v35  ;;  %1177 = vmatpush.msrb.mxu3 %v430_v44  ;;  %v286_v9 = vld [vmem:[#allocation2 + $0x710] sm:$0xff] }
 0x102   :  { %1083 = vmatpush.msrb.mxu1 %v86_v36  ;;  %1067 = vmatpush.msrb.mxu2 %v645_v21  ;;  %v366_v15 = vld [vmem:[#allocation2 + $0x990] sm:$0xff]  ;;  %v1819_v21 = vld [vmem:[%s2122_s0 + $0x8] sm:$0xff] }
 0x103   :  { %1117 = vmatpush.msrb.mxu0 %v238_v37  ;;  %1178 = vmatpush.msrb.mxu3 %v426_v20  ;;  %v198_v10 = vld [vmem:[#allocation2 + $0x450] sm:$0xff] }
 0x104   :  { %1084 = vmatpush.msrb.mxu1 %v82_v38  ;;  %1068 = vmatpush.msrb.mxu2 %v641_v39  ;;  %v398_v11 = vld [vmem:[#allocation2 + $0xa90] sm:$0xff] }
 0x105   :  { %1118 = vmatpush.msrb.mxu0 %v234_v5  ;;  %1179 = vmatpush.msrb.mxu3 %v422_v51  ;;  %v282_v13 = vld [vmem:[#allocation2 + $0x6f0] sm:$0xff] }
 0x106   :  { %1085 = vmatpush.msrb.mxu1 %v78_v41  ;;  %1069 = vmatpush.msrb.mxu2 %v637_v42  ;;  %v362_v14 = vld [vmem:[#allocation2 + $0x970] sm:$0xff]  ;;  %v1825_v42 = vld [vmem:[%s2122_s0] sm:$0xff] }
 0x107   :  { %1119 = vmatpush.msrb.mxu0 %v230_v43  ;;  %1634 = vmatmul.msk.f32.vlgmr.msrb.gmra.mxu2 %vm670_vm0, %v1801_v12  ;;  %v214_v12 = vld [vmem:[#allocation2 + $0x4d0] sm:$0xff] }
 0x108   :  { %1134 = vmatpush.msra.mxu2 %v314_v45  ;;  %1086 = vmatpush.msrb.mxu1 %v74_v46  ;;  %v194_v16 = vld [vmem:[#allocation2 + $0x430] sm:$0xff] }
 0x109   :  { %1120 = vmatpush.msrb.mxu0 %v226_v47  ;;  %1180 = vmatpush.msrb.mxu3 %v418_v53  ;;  %v394_v17 = vld [vmem:[#allocation2 + $0xa70] sm:$0xff] }
 0x10a   :  { %1135 = vmatpush.msra.mxu2 %v310_v48  ;;  %1087 = vmatpush.msrb.mxu1 %v70_v49  ;;  %v278_v18 = vld [vmem:[#allocation2 + $0x6d0] sm:$0xff] }
 0x10b   :  { %1121 = vmatpush.msrb.mxu0 %v222_v50  ;;  %1181 = vmatpush.msrb.mxu3 %v414_v0  ;;  %v358_v19 = vld [vmem:[#allocation2 + $0x950] sm:$0xff]  ;;  %v1831_v50 = vld [vmem:[%s2122_s0 + $0x18] sm:$0xff] }
 0x10c   :  { %1136 = vmatpush.msra.mxu2 %v306_v59  ;;  %1088 = vmatpush.msrb.mxu1 %v66_v26  ;;  %v190_v22 = vld [vmem:[#allocation2 + $0x410] sm:$0xff] }
 0x10d   :  { %1122 = vmatpush.msrb.mxu0 %v218_v52  ;;  %1182 = vmatpush.msrb.mxu3 %v410_v61  ;;  %v390_v23 = vld [vmem:[#allocation2 + $0xa50] sm:$0xff] }
 0x10e   :  { %1137 = vmatpush.msra.mxu2 %v302_v54  ;;  %1089 = vmatpush.msrb.mxu1 %v62_v56  ;;  %v274_v24 = vld [vmem:[#allocation2 + $0x6b0] sm:$0xff]  ;;  %v123_v56 = vld [vmem:[#allocation2 + $0x1f8] sm:$0xff] }
 0x10f   :  { %1123 = vmatpush.msrb.mxu0 %v214_v12  ;;  %1183 = vmatpush.msrb.mxu3 %v406_v2  ;;  %v354_v25 = vld [vmem:[#allocation2 + $0x930] sm:$0xff]  ;;  %v115_v2 = vld [vmem:[#allocation2 + $0x1b8] sm:$0xff] }
 0x110   :  { %1138 = vmatpush.msra.mxu2 %v298_v57  ;;  %1154 = vmatpush.msra.mxu1 %v378_v58  ;;  %v506_v27 = vld [vmem:[#allocation2 + $0xdf0] sm:$0xff]  ;;  %v1843_v58 = vld [vmem:[%s2122_s0 + $0x28] sm:$0xff] }
 0x111   :  { %1124 = vmatpush.msrb.mxu0 %v210_v60  ;;  %1184 = vmatpush.msrb.mxu3 %v402_v8  ;;  %v386_v28 = vld [vmem:[#allocation2 + $0xa30] sm:$0xff]  ;;  %v119_v60 = vld [vmem:[#allocation2 + $0x1d8] sm:$0xff] }
 0x112   :  { %1139 = vmatpush.msra.mxu2 %v294_v62  ;;  %1155 = vmatpush.msra.mxu1 %v374_v63  ;;  %v270_v29 = vld [vmem:[#allocation2 + $0x690] sm:$0xff] }
 0x113   :  { %1125 = vmatpush.msrb.mxu0 %v206_v1  ;;  %1185 = vmatpush.msrb.mxu3 %v398_v11  ;;  %v350_v30 = vld [vmem:[#allocation2 + $0x910] sm:$0xff] }
 0x114   :  { %1140 = vmatpush.msra.mxu2 %v290_v3  ;;  %1156 = vmatpush.msra.mxu1 %v370_v4  ;;  %v502_v31 = vld [vmem:[#allocation2 + $0xdd0] sm:$0xff]  ;;  %v1849_v4 = vld [vmem:[%s2122_s0 + $0x20] sm:$0xff] }
 0x115   :  { %1126 = vmatpush.msrb.mxu0 %v202_v6  ;;  %1186 = vmatpush.msrb.mxu3 %v394_v17  ;;  %v382_v32 = vld [vmem:[#allocation2 + $0xa10] sm:$0xff] }
 0x116   :  { %1141 = vmatpush.msra.mxu2 %v286_v9  ;;  %1157 = vmatpush.msra.mxu1 %v366_v15  ;;  %v266_v33 = vld [vmem:[#allocation2 + $0x670] sm:$0xff]  ;;  %v111_v9 = vld [vmem:[#allocation2 + $0x198] sm:$0xff] }
 0x117   :  { %1127 = vmatpush.msrb.mxu0 %v198_v10  ;;  %1187 = vmatpush.msrb.mxu3 %v390_v23  ;;  %v346_v34 = vld [vmem:[#allocation2 + $0x8f0] sm:$0xff] }
 0x118   :  { %1142 = vmatpush.msra.mxu2 %v282_v13  ;;  %1158 = vmatpush.msra.mxu1 %v362_v14  ;;  %v498_v35 = vld [vmem:[#allocation2 + $0xdb0] sm:$0xff]  ;;  %v107_v13 = vld [vmem:[#allocation2 + $0x178] sm:$0xff] }
 0x119   :  { %1128 = vmatpush.msrb.mxu0 %v194_v16  ;;  %1188 = vmatpush.msrb.mxu3 %v386_v28  ;;  %v658_v55 = vld [vmem:[#allocation2 + $0x12b0] sm:$0xff] }
 0x11a   :  { %1143 = vmatpush.msra.mxu2 %v278_v18  ;;  %1159 = vmatpush.msra.mxu1 %v358_v19  ;;  %v262_v36 = vld [vmem:[#allocation2 + $0x650] sm:$0xff]  ;;  %v103_v18 = vld [vmem:[#allocation2 + $0x158] sm:$0xff] }
 0x11b   :  { %1129 = vmatpush.msrb.mxu0 %v190_v22  ;;  %1189 = vmatpush.msrb.mxu3 %v382_v32  ;;  %v342_v37 = vld [vmem:[#allocation2 + $0x8d0] sm:$0xff] }
 0x11c   :  { %1144 = vmatpush.msra.mxu2 %v274_v24  ;;  %1160 = vmatpush.msra.mxu1 %v354_v25  ;;  %v494_v7 = vld [vmem:[#allocation2 + $0xd90] sm:$0xff]  ;;  %v99_v24 = vld [vmem:[#allocation2 + $0x138] sm:$0xff] }
 0x11d   :  { %1194 = vmatpush.msra.mxu0 %v506_v27  ;;  %1110 = vmatmul.f32.vlgmr.msra.gmra.mxu3 %v1819_v21  ;;  %v654_v38 = vld [vmem:[#allocation2 + $0x1290] sm:$0xff] }
 0x11e   :  { %1145 = vmatpush.msra.mxu2 %v270_v29  ;;  %1161 = vmatpush.msra.mxu1 %v350_v30  ;;  %v258_v39 = vld [vmem:[#allocation2 + $0x630] sm:$0xff]  ;;  %v95_v29 = vld [vmem:[#allocation2 + $0x118] sm:$0xff] }
 0x11f   :  { %1195 = vmatpush.msra.mxu0 %v502_v31  ;;  %1264 = vmatpush.msra.mxu3 %v658_v55  ;;  %v338_v5 = vld [vmem:[#allocation2 + $0x8b0] sm:$0xff] }
 0x120   :  { %1146 = vmatpush.msra.mxu2 %v266_v33  ;;  %1162 = vmatpush.msra.mxu1 %v346_v34  ;;  %v490_v40 = vld [vmem:[#allocation2 + $0xd70] sm:$0xff]  ;;  %v91_v33 = vld [vmem:[#allocation2 + $0xf8] sm:$0xff] }
 0x121   :  { %1196 = vmatpush.msra.mxu0 %v498_v35  ;;  %v650_v41 = vld [vmem:[#allocation2 + $0x1270] sm:$0xff]  ;;  %1265 = vmatpush.msra.mxu3 %v654_v38  ;;  %v187_v34 = vld [vmem:[#allocation2 + $0x3f8] sm:$0xff] }
 0x122   :  { %1147 = vmatpush.msra.mxu2 %v262_v36  ;;  %1163 = vmatpush.msra.mxu1 %v342_v37  ;;  %v254_v43 = vld [vmem:[#allocation2 + $0x610] sm:$0xff]  ;;  %v87_v37 = vld [vmem:[#allocation2 + $0xd8] sm:$0xff] }
 0x123   :  { %1197 = vmatpush.msra.mxu0 %v494_v7  ;;  %1090 = vmatmul.f32.vlgmr.msrb.gmra.mxu1 %v1825_v42  ;;  %v334_v44 = vld [vmem:[#allocation2 + $0x890] sm:$0xff]  ;;  %v183_v7 = vld [vmem:[#allocation2 + $0x3d8] sm:$0xff] }
 0x124   :  { %1148 = vmatpush.msra.mxu2 %v258_v39  ;;  %1164 = vmatpush.msra.mxu1 %v338_v5  ;;  %v486_v45 = vld [vmem:[#allocation2 + $0xd50] sm:$0xff]  ;;  %v83_v5 = vld [vmem:[#allocation2 + $0xb8] sm:$0xff] }
 0x125   :  { %v646_v46 = vld [vmem:[#allocation2 + $0x1250] sm:$0xff]  ;;  %1198 = vmatpush.msra.mxu0 %v490_v40  ;;  %1266 = vmatpush.msra.mxu3 %v650_v41  ;;  %v179_v40 = vld [vmem:[#allocation2 + $0x3b8] sm:$0xff] }
 0x126   :  { %1149 = vmatpush.msra.mxu2 %v254_v43  ;;  %1165 = vmatpush.msra.mxu1 %v334_v44  ;;  %v570_v47 = vld [vmem:[#allocation2 + $0xff0] sm:$0xff]  ;;  %v79_v44 = vld [vmem:[#allocation2 + $0x98] sm:$0xff] }
 0x127   :  { %v330_v20 = vld [vmem:[#allocation2 + $0x870] sm:$0xff]  ;;  %1199 = vmatpush.msra.mxu0 %v486_v45  ;;  %1267 = vmatpush.msra.mxu3 %v646_v46  ;;  %v175_v45 = vld [vmem:[#allocation2 + $0x398] sm:$0xff] }
 0x128   :  { %v482_v48 = vld [vmem:[#allocation2 + $0xd30] sm:$0xff]  ;;  %1150 = vmatmul.f32.vlgmr.msra.gmra.mxu2 %v1831_v50  ;;  %1166 = vmatpush.msra.mxu1 %v330_v20  ;;  %v75_v20 = vld [vmem:[#allocation2 + $0x78] sm:$0xff] }
 0x129   :  { %v642_v49 = vld [vmem:[#allocation2 + $0x1230] sm:$0xff]  ;;  %1214 = vmatpush.msrb.mxu2 %v570_v47  ;;  %1200 = vmatpush.msra.mxu0 %v482_v48  ;;  %v171_v48 = vld [vmem:[#allocation2 + $0x378] sm:$0xff] }
 0x12a   :  { %v1837_v51 = vld [vmem:[%s2122_s0 + $0x10] sm:$0xff]  ;;  %1268 = vmatpush.msra.mxu3 %v642_v49 }
 0x12b   :  { %1130 = vmatmul.f32.vlgmr.msrb.gmra.mxu0 %v1837_v51  ;;  %v566_v59 = vld [vmem:[#allocation2 + $0xfd0] sm:$0xff]  ;;  %1190 = vmatmul.f32.vlgmr.msrb.gmra.mxu3 %v1843_v58 }
 0x12c   :  { %v326_v26 = vld [vmem:[#allocation2 + $0x850] sm:$0xff]  ;;  %1215 = vmatpush.msrb.mxu2 %v566_v59 }
 0x12d   :  { %v478_v52 = vld [vmem:[#allocation2 + $0xd10] sm:$0xff]  ;;  %1167 = vmatpush.msra.mxu1 %v326_v26  ;;  %v71_v26 = vld [vmem:[#allocation2 + $0x58] sm:$0xff] }
 0x12e   :  { %v638_v53 = vld [vmem:[#allocation2 + $0x1210] sm:$0xff]  ;;  %1201 = vmatpush.msra.mxu0 %v478_v52  ;;  %v167_v52 = vld [vmem:[#allocation2 + $0x358] sm:$0xff] }
 0x12f   :  { %v562_v54 = vld [vmem:[#allocation2 + $0xfb0] sm:$0xff]  ;;  %1269 = vmatpush.msra.mxu3 %v638_v53  ;;  %v251_v53 = vld [vmem:[#allocation2 + $0x5f8] sm:$0xff] }
 0x130   :  { %v322_v12 = vld [vmem:[#allocation2 + $0x830] sm:$0xff]  ;;  %1216 = vmatpush.msrb.mxu2 %v562_v54 }
 0x131   :  { %v474_v0 = vld [vmem:[#allocation2 + $0xcf0] sm:$0xff]  ;;  %1274 = vmatpush.msrb.mxu3 %v123_v56  ;;  %1168 = vmatpush.msra.mxu1 %v322_v12  ;;  %v67_v56 = vld [vmem:[#allocation2 + $0x38] sm:$0xff] }
 0x132   :  { %v558_v57 = vld [vmem:[#allocation2 + $0xf90] sm:$0xff]  ;;  %1202 = vmatpush.msra.mxu0 %v474_v0  ;;  %v163_v12 = vld [vmem:[#allocation2 + $0x338] sm:$0xff] }
 0x133   :  { %v318_v61 = vld [vmem:[#allocation2 + $0x810] sm:$0xff]  ;;  %1217 = vmatpush.msrb.mxu2 %v558_v57  ;;  %1275 = vmatpush.msrb.mxu3 %v119_v60  ;;  %v1861_v0 = vld [vmem:[%s2122_s0 + $0x38] sm:$0xff] }
 0x134   :  { %v470_v62 = vld [vmem:[#allocation2 + $0xcd0] sm:$0xff]  ;;  %1169 = vmatpush.msra.mxu1 %v318_v61  ;;  %v247_v57 = vld [vmem:[#allocation2 + $0x5d8] sm:$0xff] }
 0x135   :  { %v554_v63 = vld [vmem:[#allocation2 + $0xf70] sm:$0xff]  ;;  %1203 = vmatpush.msra.mxu0 %v470_v62  ;;  %1170 = vmatmul.f32.vlgmr.msra.gmra.mxu1 %v1849_v4  ;;  %v63_v61 = vld [vmem:[#allocation2 + $0x18] sm:$0xff] }
 0x136   :  { %v634_v1 = vld [vmem:[#allocation2 + $0x11f0] sm:$0xff]  ;;  %1218 = vmatpush.msrb.mxu2 %v554_v63  ;;  %1276 = vmatpush.msrb.mxu3 %v115_v2  ;;  %v159_v62 = vld [vmem:[#allocation2 + $0x318] sm:$0xff] }
 0x137   :  { %v466_v3 = vld [vmem:[#allocation2 + $0xcb0] sm:$0xff]  ;;  %1234 = vmatpush.msrb.mxu1 %v634_v1  ;;  %v243_v63 = vld [vmem:[#allocation2 + $0x5b8] sm:$0xff] }
 0x138   :  { %v550_v6 = vld [vmem:[#allocation2 + $0xf50] sm:$0xff]  ;;  %1204 = vmatpush.msra.mxu0 %v466_v3  ;;  %1277 = vmatpush.msrb.mxu3 %v111_v9  ;;  %v379_v1 = vld [vmem:[#allocation2 + $0x9f8] sm:$0xff] }
 0x139   :  { %v630_v8 = vld [vmem:[#allocation2 + $0x11d0] sm:$0xff]  ;;  %1219 = vmatpush.msrb.mxu2 %v550_v6  ;;  %v155_v3 = vld [vmem:[#allocation2 + $0x2f8] sm:$0xff] }
 0x13a   :  { %v462_v15 = vld [vmem:[#allocation2 + $0xc90] sm:$0xff]  ;;  %1235 = vmatpush.msrb.mxu1 %v630_v8  ;;  %1278 = vmatpush.msrb.mxu3 %v107_v13  ;;  %v239_v6 = vld [vmem:[#allocation2 + $0x598] sm:$0xff]  ;;  %v1867_v8 = vld [vmem:[%s2122_s0 + $0x48] sm:$0xff] }
 0x13b   :  { %v546_v10 = vld [vmem:[#allocation2 + $0xf30] sm:$0xff]  ;;  %1205 = vmatpush.msra.mxu0 %v462_v15  ;;  %1635 = vmatmul.msk.f32.vlgmr.msra.gmra.mxu3 %vm670_vm0, %v1867_v8  ;;  %v375_v9 = vld [vmem:[#allocation2 + $0x9d8] sm:$0xff] }
 0x13c   :  { %v626_v11 = vld [vmem:[#allocation2 + $0x11b0] sm:$0xff]  ;;  %1220 = vmatpush.msrb.mxu2 %v546_v10  ;;  %1279 = vmatpush.msrb.mxu3 %v103_v18  ;;  %v151_v10 = vld [vmem:[#allocation2 + $0x2d8] sm:$0xff] }
 0x13d   :  { %v458_v14 = vld [vmem:[#allocation2 + $0xc70] sm:$0xff]  ;;  %1236 = vmatpush.msrb.mxu1 %v626_v11  ;;  %v235_v11 = vld [vmem:[#allocation2 + $0x578] sm:$0xff] }
 0x13e   :  { %v542_v16 = vld [vmem:[#allocation2 + $0xf10] sm:$0xff]  ;;  %1206 = vmatpush.msra.mxu0 %v458_v14  ;;  %1280 = vmatpush.msrb.mxu3 %v99_v24  ;;  %v315_v13 = vld [vmem:[#allocation2 + $0x7f8] sm:$0xff] }
 0x13f   :  { %v622_v17 = vld [vmem:[#allocation2 + $0x1190] sm:$0xff]  ;;  %1221 = vmatpush.msrb.mxu2 %v542_v16  ;;  %v371_v14 = vld [vmem:[#allocation2 + $0x9b8] sm:$0xff] }
 0x140   :  { %v454_v19 = vld [vmem:[#allocation2 + $0xc50] sm:$0xff]  ;;  %1237 = vmatpush.msrb.mxu1 %v622_v17  ;;  %1281 = vmatpush.msrb.mxu3 %v95_v29  ;;  %v147_v16 = vld [vmem:[#allocation2 + $0x2b8] sm:$0xff]  ;;  %v1874_v17 = vld [vmem:[%s2122_s0 + $0x40] sm:$0xff] }
 0x141   :  { %v538_v22 = vld [vmem:[#allocation2 + $0xef0] sm:$0xff]  ;;  %1207 = vmatpush.msra.mxu0 %v454_v19  ;;  %v231_v18 = vld [vmem:[#allocation2 + $0x558] sm:$0xff] }
 0x142   :  { %v618_v23 = vld [vmem:[#allocation2 + $0x1170] sm:$0xff]  ;;  %1222 = vmatpush.msrb.mxu2 %v538_v22  ;;  %1282 = vmatpush.msrb.mxu3 %v91_v33  ;;  %v311_v19 = vld [vmem:[#allocation2 + $0x7d8] sm:$0xff] }
 0x143   :  { %v450_v25 = vld [vmem:[#allocation2 + $0xc30] sm:$0xff]  ;;  %1238 = vmatpush.msrb.mxu1 %v618_v23  ;;  %v367_v22 = vld [vmem:[#allocation2 + $0x998] sm:$0xff] }
 0x144   :  { %v534_v27 = vld [vmem:[#allocation2 + $0xed0] sm:$0xff]  ;;  %1208 = vmatpush.msra.mxu0 %v450_v25  ;;  %1283 = vmatpush.msrb.mxu3 %v87_v37  ;;  %v143_v23 = vld [vmem:[#allocation2 + $0x298] sm:$0xff] }
 0x145   :  { %v614_v28 = vld [vmem:[#allocation2 + $0x1150] sm:$0xff]  ;;  %1223 = vmatpush.msrb.mxu2 %v534_v27  ;;  %v227_v24 = vld [vmem:[#allocation2 + $0x538] sm:$0xff] }
 0x146   :  { %v446_v30 = vld [vmem:[#allocation2 + $0xc10] sm:$0xff]  ;;  %1239 = vmatpush.msrb.mxu1 %v614_v28  ;;  %1284 = vmatpush.msrb.mxu3 %v83_v5  ;;  %v307_v25 = vld [vmem:[#allocation2 + $0x7b8] sm:$0xff] }
 0x147   :  { %v530_v31 = vld [vmem:[#allocation2 + $0xeb0] sm:$0xff]  ;;  %1209 = vmatpush.msra.mxu0 %v446_v30  ;;  %v363_v27 = vld [vmem:[#allocation2 + $0x978] sm:$0xff] }
 0x148   :  { %v610_v32 = vld [vmem:[#allocation2 + $0x1130] sm:$0xff]  ;;  %1224 = vmatpush.msrb.mxu2 %v530_v31  ;;  %1285 = vmatpush.msrb.mxu3 %v79_v44  ;;  %v139_v28 = vld [vmem:[#allocation2 + $0x278] sm:$0xff] }
 0x149   :  { %v526_v35 = vld [vmem:[#allocation2 + $0xe90] sm:$0xff]  ;;  %1240 = vmatpush.msrb.mxu1 %v610_v32  ;;  %1294 = vmatpush.msrb.mxu0 %v187_v34  ;;  %v223_v29 = vld [vmem:[#allocation2 + $0x518] sm:$0xff] }
 0x14a   :  { %v1855_v55 = vld [vmem:[%s2122_s0 + $0x30] sm:$0xff]  ;;  %1225 = vmatpush.msrb.mxu2 %v526_v35  ;;  %1286 = vmatpush.msrb.mxu3 %v75_v20  ;;  %v303_v30 = vld [vmem:[#allocation2 + $0x798] sm:$0xff] }
 0x14b   :  { %1210 = vmatmul.f32.vlgmr.msra.gmra.mxu0 %v1855_v55  ;;  %v606_v36 = vld [vmem:[#allocation2 + $0x1110] sm:$0xff]  ;;  %v359_v31 = vld [vmem:[#allocation2 + $0x958] sm:$0xff] }
 0x14c   :  { %v522_v38 = vld [vmem:[#allocation2 + $0xe70] sm:$0xff]  ;;  %1241 = vmatpush.msrb.mxu1 %v606_v36  ;;  %1295 = vmatpush.msrb.mxu0 %v183_v7  ;;  %v135_v32 = vld [vmem:[#allocation2 + $0x258] sm:$0xff] }
 0x14d   :  { %v602_v39 = vld [vmem:[#allocation2 + $0x10f0] sm:$0xff]  ;;  %1226 = vmatpush.msrb.mxu2 %v522_v38  ;;  %1287 = vmatpush.msrb.mxu3 %v71_v26  ;;  %v219_v33 = vld [vmem:[#allocation2 + $0x4f8] sm:$0xff] }
 0x14e   :  { %v518_v41 = vld [vmem:[#allocation2 + $0xe50] sm:$0xff]  ;;  %1242 = vmatpush.msrb.mxu1 %v602_v39  ;;  %1296 = vmatpush.msrb.mxu0 %v179_v40  ;;  %v299_v34 = vld [vmem:[#allocation2 + $0x778] sm:$0xff] }
 0x14f   :  { %v598_v43 = vld [vmem:[#allocation2 + $0x10d0] sm:$0xff]  ;;  %1227 = vmatpush.msrb.mxu2 %v518_v41  ;;  %1288 = vmatpush.msrb.mxu3 %v67_v56  ;;  %v355_v35 = vld [vmem:[#allocation2 + $0x938] sm:$0xff] }
 0x150   :  { %v514_v46 = vld [vmem:[#allocation2 + $0xe30] sm:$0xff]  ;;  %1243 = vmatpush.msrb.mxu1 %v598_v43  ;;  %1297 = vmatpush.msrb.mxu0 %v175_v45  ;;  %v131_v36 = vld [vmem:[#allocation2 + $0x238] sm:$0xff] }
 0x151   :  { %v594_v47 = vld [vmem:[#allocation2 + $0x10b0] sm:$0xff]  ;;  %1228 = vmatpush.msrb.mxu2 %v514_v46  ;;  %1289 = vmatpush.msrb.mxu3 %v63_v61  ;;  %v215_v37 = vld [vmem:[#allocation2 + $0x4d8] sm:$0xff] }
 0x152   :  { %v510_v49 = vld [vmem:[#allocation2 + $0xe10] sm:$0xff]  ;;  %1244 = vmatpush.msrb.mxu1 %v594_v47  ;;  %1298 = vmatpush.msrb.mxu0 %v171_v48  ;;  %v295_v7 = vld [vmem:[#allocation2 + $0x758] sm:$0xff] }
 0x153   :  { %v590_v59 = vld [vmem:[#allocation2 + $0x1090] sm:$0xff]  ;;  %1229 = vmatpush.msrb.mxu2 %v510_v49  ;;  %1354 = vmatpush.msra.mxu3 %v379_v1  ;;  %v351_v38 = vld [vmem:[#allocation2 + $0x918] sm:$0xff] }
 0x154   :  { %v586_v54 = vld [vmem:[#allocation2 + $0x1070] sm:$0xff]  ;;  %1245 = vmatpush.msrb.mxu1 %v590_v59  ;;  %1299 = vmatpush.msrb.mxu0 %v167_v52  ;;  %v127_v39 = vld [vmem:[#allocation2 + $0x218] sm:$0xff] }
 0x155   :  { %1230 = vmatmul.f32.vlgmr.msrb.gmra.mxu2 %v1861_v0  ;;  %v582_v60 = vld [vmem:[#allocation2 + $0x1050] sm:$0xff]  ;;  %1355 = vmatpush.msra.mxu3 %v375_v9  ;;  %v211_v5 = vld [vmem:[#allocation2 + $0x4b8] sm:$0xff] }
 0x156   :  { %1314 = vmatpush.msra.mxu2 %v251_v53  ;;  %1246 = vmatpush.msrb.mxu1 %v586_v54  ;;  %v578_v2 = vld [vmem:[#allocation2 + $0x1030] sm:$0xff]  ;;  %v291_v40 = vld [vmem:[#allocation2 + $0x738] sm:$0xff] }
 0x157   :  { %1300 = vmatpush.msrb.mxu0 %v163_v12  ;;  %v574_v15 = vld [vmem:[#allocation2 + $0x1010] sm:$0xff]  ;;  %1356 = vmatpush.msra.mxu3 %v371_v14  ;;  %v347_v41 = vld [vmem:[#allocation2 + $0x8f8] sm:$0xff] }
 0x158   :  { %1315 = vmatpush.msra.mxu2 %v247_v57  ;;  %1247 = vmatpush.msrb.mxu1 %v582_v60  ;;  %v443_v43 = vld [vmem:[#allocation2 + $0xbf8] sm:$0xff] }
 0x159   :  { %1301 = vmatpush.msrb.mxu0 %v159_v62  ;;  %1357 = vmatpush.msra.mxu3 %v367_v22  ;;  %v207_v44 = vld [vmem:[#allocation2 + $0x498] sm:$0xff] }
 0x15a   :  { %1316 = vmatpush.msra.mxu2 %v243_v63  ;;  %1248 = vmatpush.msrb.mxu1 %v578_v2  ;;  %v287_v45 = vld [vmem:[#allocation2 + $0x718] sm:$0xff] }
 0x15b   :  { %1302 = vmatpush.msrb.mxu0 %v155_v3  ;;  %1358 = vmatpush.msra.mxu3 %v363_v27  ;;  %v343_v46 = vld [vmem:[#allocation2 + $0x8d8] sm:$0xff] }
 0x15c   :  { %1317 = vmatpush.msra.mxu2 %v239_v6  ;;  %1249 = vmatpush.msrb.mxu1 %v574_v15  ;;  %v439_v47 = vld [vmem:[#allocation2 + $0xbd8] sm:$0xff] }
 0x15d   :  { %1303 = vmatpush.msrb.mxu0 %v151_v10  ;;  %1250 = vmatmul.f32.vlgmr.msrb.gmra.mxu1 %v1874_v17  ;;  %v203_v20 = vld [vmem:[#allocation2 + $0x478] sm:$0xff] }
 0x15e   :  { %1318 = vmatpush.msra.mxu2 %v235_v11  ;;  %1334 = vmatpush.msra.mxu1 %v315_v13  ;;  %v283_v48 = vld [vmem:[#allocation2 + $0x6f8] sm:$0xff] }
 0x15f   :  { %1304 = vmatpush.msrb.mxu0 %v147_v16  ;;  %1359 = vmatpush.msra.mxu3 %v359_v31  ;;  %v339_v49 = vld [vmem:[#allocation2 + $0x8b8] sm:$0xff] }
 0x160   :  { %1319 = vmatpush.msra.mxu2 %v231_v18  ;;  %1335 = vmatpush.msra.mxu1 %v311_v19  ;;  %v435_v59 = vld [vmem:[#allocation2 + $0xbb8] sm:$0xff] }
 0x161   :  { %1305 = vmatpush.msrb.mxu0 %v143_v23  ;;  %1360 = vmatpush.msra.mxu3 %v355_v35  ;;  %v199_v26 = vld [vmem:[#allocation2 + $0x458] sm:$0xff] }
 0x162   :  { %1320 = vmatpush.msra.mxu2 %v227_v24  ;;  %1336 = vmatpush.msra.mxu1 %v307_v25  ;;  %v279_v52 = vld [vmem:[#allocation2 + $0x6d8] sm:$0xff] }
 0x163   :  { %1306 = vmatpush.msrb.mxu0 %v139_v28  ;;  %1361 = vmatpush.msra.mxu3 %v351_v38  ;;  %v335_v53 = vld [vmem:[#allocation2 + $0x898] sm:$0xff]  ;;  %v1883_v38 = vpop.f32.mrf.mxu0 }
 0x164   :  { %1321 = vmatpush.msra.mxu2 %v223_v29  ;;  %1337 = vmatpush.msra.mxu1 %v303_v30  ;;  %v431_v54 = vld [vmem:[#allocation2 + $0xb98] sm:$0xff] }
 0x165   :  { %1307 = vmatpush.msrb.mxu0 %v135_v32  ;;  %1362 = vmatpush.msra.mxu3 %v347_v41  ;;  %v195_v56 = vld [vmem:[#allocation2 + $0x438] sm:$0xff] }
 0x166   :  { %1322 = vmatpush.msra.mxu2 %v219_v33  ;;  %1338 = vmatpush.msra.mxu1 %v299_v34  ;;  %v275_v12 = vld [vmem:[#allocation2 + $0x6b8] sm:$0xff]  ;;  %v1881_v33 = vpop.f32.mrf.mxu2 }
 0x167   :  { %1308 = vmatpush.msrb.mxu0 %v131_v36  ;;  %1363 = vmatpush.msra.mxu3 %v343_v46  ;;  %v331_v57 = vld [vmem:[#allocation2 + $0x878] sm:$0xff] }
 0x168   :  { %1323 = vmatpush.msra.mxu2 %v215_v37  ;;  %1339 = vmatpush.msra.mxu1 %v295_v7  ;;  %v427_v60 = vld [vmem:[#allocation2 + $0xb78] sm:$0xff] }
 0x169   :  { %1309 = vmatpush.msrb.mxu0 %v127_v39  ;;  %1364 = vmatpush.msra.mxu3 %v339_v49  ;;  %v191_v61 = vld [vmem:[#allocation2 + $0x418] sm:$0xff]  ;;  %v1885_v39 = vpop.f32.mrf.mxu3 }
 0x16a   :  { %1324 = vmatpush.msra.mxu2 %v211_v5  ;;  %1340 = vmatpush.msra.mxu1 %v291_v40  ;;  %v271_v62 = vld [vmem:[#allocation2 + $0x698] sm:$0xff] }
 0x16b   :  { %1374 = vmatpush.msra.mxu0 %v443_v43  ;;  %1365 = vmatpush.msra.mxu3 %v335_v53  ;;  %v327_v63 = vld [vmem:[#allocation2 + $0x858] sm:$0xff] }
 0x16c   :  { %1325 = vmatpush.msra.mxu2 %v207_v44  ;;  %1341 = vmatpush.msra.mxu1 %v287_v45  ;;  %v423_v1 = vld [vmem:[#allocation2 + $0xb58] sm:$0xff] }
 0x16d   :  { %1375 = vmatpush.msra.mxu0 %v439_v47  ;;  %1366 = vmatpush.msra.mxu3 %v331_v57  ;;  %v507_v2 = vld [vmem:[#allocation2 + $0xdf8] sm:$0xff] }
 0x16e   :  { %1326 = vmatpush.msra.mxu2 %v203_v20  ;;  %1342 = vmatpush.msra.mxu1 %v283_v48  ;;  %v267_v3 = vld [vmem:[#allocation2 + $0x678] sm:$0xff]  ;;  %v1892_v49 = vpop.f32.mrf.mxu2 }
 0x16f   :  { %1376 = vmatpush.msra.mxu0 %v435_v59  ;;  %v323_v6 = vld [vmem:[#allocation2 + $0x838] sm:$0xff]  ;;  %1367 = vmatpush.msra.mxu3 %v327_v63 }
 0x170   :  { %1327 = vmatpush.msra.mxu2 %v199_v26  ;;  %1343 = vmatpush.msra.mxu1 %v279_v52  ;;  %v419_v9 = vld [vmem:[#allocation2 + $0xb38] sm:$0xff]  ;;  %v1894_v52 = vld [vmem:[#allocation4] sm:$0xf] }
 0x171   :  { %1377 = vmatpush.msra.mxu0 %v431_v54  ;;  %v503_v15 = vld [vmem:[#allocation2 + $0xdd8] sm:$0xff]  ;;  %1368 = vmatpush.msra.mxu3 %v323_v6  ;;  %v662_v57 = vperm.slane %v1894_v52, 0 }
 0x172   :  { %1328 = vmatpush.msra.mxu2 %v195_v56  ;;  %1344 = vmatpush.msra.mxu1 %v275_v12  ;;  %v263_v10 = vld [vmem:[#allocation2 + $0x658] sm:$0xff] }
 0x173   :  { %1378 = vmatpush.msra.mxu0 %v427_v60  ;;  %v319_v11 = vld [vmem:[#allocation2 + $0x818] sm:$0xff]  ;;  %1290 = vmatmul.f32.vlgmr.msrb.gmra.mxu3 %v1825_v42  ;;  %v1879_v42 = vpop.f32.mrf.mxu1  ;;  %v1897_v60 = vpop.f32.mrf.mxu0 }
 0x174   :  { %1329 = vmatpush.msra.mxu2 %v191_v61  ;;  %1345 = vmatpush.msra.mxu1 %v271_v62  ;;  %v415_v13 = vld [vmem:[#allocation2 + $0xb18] sm:$0xff]  ;;  %v1899_v61 = vpop.f32.mrf.mxu3 }
 0x175   :  { %1379 = vmatpush.msra.mxu0 %v423_v1  ;;  %v499_v14 = vld [vmem:[#allocation2 + $0xdb8] sm:$0xff]  ;;  %1369 = vmatpush.msra.mxu3 %v319_v11  ;;  %v692_v11 = vadd.f32 %v1883_v38, %v662_v57 }
 0x176   :  { %1394 = vmatpush.msrb.mxu2 %v507_v2  ;;  %1346 = vmatpush.msra.mxu1 %v267_v3  ;;  %v635_v16 = vld [vmem:[#allocation2 + $0x11f8] sm:$0xff] }
 0x177   :  { %1380 = vmatpush.msra.mxu0 %v419_v9  ;;  %v259_v18 = vld [vmem:[#allocation2 + $0x638] sm:$0xff]  ;;  %1434 = vmatpush.msrb.mxu3 %v635_v16  ;;  %v663_v9 = vperm.slane %v1894_v52, 1 }
 0x178   :  { %1395 = vmatpush.msrb.mxu2 %v503_v15  ;;  %1347 = vmatpush.msra.mxu1 %v263_v10  ;;  %v411_v19 = vld [vmem:[#allocation2 + $0xaf8] sm:$0xff] }
 0x179   :  { %1381 = vmatpush.msra.mxu0 %v415_v13  ;;  %v495_v22 = vld [vmem:[#allocation2 + $0xd98] sm:$0xff]  ;;  %1330 = vmatmul.f32.vlgmr.msra.gmra.mxu2 %v1837_v51  ;;  %v891_v13 = vpop.f32.mrf.mxu2 }
 0x17a   :  { %1396 = vmatpush.msrb.mxu2 %v499_v14  ;;  %v631_v23 = vld [vmem:[#allocation2 + $0x11d8] sm:$0xff]  ;;  %1348 = vmatpush.msra.mxu1 %v259_v18 }
 0x17b   :  { %v255_v24 = vld [vmem:[#allocation2 + $0x618] sm:$0xff]  ;;  %1382 = vmatpush.msra.mxu0 %v411_v19  ;;  %1435 = vmatpush.msrb.mxu3 %v631_v23  ;;  %v1890_v48 = vpop.f32.mrf.mxu1 }
 0x17c   :  { %v407_v25 = vld [vmem:[#allocation2 + $0xad8] sm:$0xff]  ;;  %1397 = vmatpush.msrb.mxu2 %v495_v22  ;;  %1349 = vmatpush.msra.mxu1 %v255_v24  ;;  %v892_v24 = vadd.f32 %v891_v13, %v663_v9 }
 0x17d   :  { %v491_v27 = vld [vmem:[#allocation2 + $0xd78] sm:$0xff]  ;;  %1383 = vmatpush.msra.mxu0 %v407_v25  ;;  %1370 = vmatmul.f32.vlgmr.msra.gmra.mxu3 %v1849_v4 }
 0x17e   :  { %v571_v28 = vld [vmem:[#allocation2 + $0xff8] sm:$0xff]  ;;  %1398 = vmatpush.msrb.mxu2 %v491_v27  ;;  %1310 = vmatmul.f32.vlgmr.msrb.gmra.mxu0 %v1819_v21 }
 0x17f   :  { %v627_v29 = vld [vmem:[#allocation2 + $0x11b8] sm:$0xff]  ;;  %1414 = vmatpush.msrb.mxu1 %v571_v28  ;;  %v712_v28 = vadd.f32 %v1879_v42, %v692_v11 }
 0x180   :  { %v403_v30 = vld [vmem:[#allocation2 + $0xab8] sm:$0xff]  ;;  %1436 = vmatpush.msrb.mxu3 %v627_v29  ;;  %1350 = vmatmul.f32.vlgmr.msra.gmra.mxu1 %v1831_v50  ;;  %v1907_v29 = vpop.f32.mrf.mxu0 }
 0x181   :  { %v487_v31 = vld [vmem:[#allocation2 + $0xd58] sm:$0xff]  ;;  %1384 = vmatpush.msra.mxu0 %v403_v30  ;;  %v911_v30 = vpop.f32.mrf.mxu3 }
 0x182   :  { %v567_v32 = vld [vmem:[#allocation2 + $0xfd8] sm:$0xff]  ;;  %1399 = vmatpush.msrb.mxu2 %v487_v31 }
 0x183   :  { %v623_v34 = vld [vmem:[#allocation2 + $0x1198] sm:$0xff]  ;;  %1415 = vmatpush.msrb.mxu1 %v567_v32 }
 0x184   :  { %v399_v35 = vld [vmem:[#allocation2 + $0xa98] sm:$0xff]  ;;  %1437 = vmatpush.msrb.mxu3 %v623_v34 }
 0x185   :  { %v483_v36 = vld [vmem:[#allocation2 + $0xd38] sm:$0xff]  ;;  %1385 = vmatpush.msra.mxu0 %v399_v35 }
 0x186   :  { %v563_v37 = vld [vmem:[#allocation2 + $0xfb8] sm:$0xff]  ;;  %1400 = vmatpush.msrb.mxu2 %v483_v36  ;;  %v912_v36 = vadd.f32 %v911_v30, %v892_v24  ;;  %v1519_v24 = vld [vmem:[%s2125_s3 + $0x148] sm:$0xff] }
 0x187   :  { %v619_v7 = vld [vmem:[#allocation2 + $0x1178] sm:$0xff]  ;;  %1416 = vmatpush.msrb.mxu1 %v563_v37 }
 0x188   :  { %v395_v51 = vld [vmem:[#allocation2 + $0xa78] sm:$0xff]  ;;  %1438 = vmatpush.msrb.mxu3 %v619_v7  ;;  %v1508_v7 = vld [vmem:[%s2125_s3 + $0xf0] sm:$0xff] }
 0x189   :  { %v479_v5 = vld [vmem:[#allocation2 + $0xd18] sm:$0xff]  ;;  %1386 = vmatpush.msra.mxu0 %v395_v51  ;;  %v732_v51 = vadd.f32 %v1881_v33, %v712_v28  ;;  %v1491_v33 = vld [vmem:[%s2125_s3 + $0x68] sm:$0xff] }
 0x18a   :  { %v559_v40 = vld [vmem:[#allocation2 + $0xf98] sm:$0xff]  ;;  %1401 = vmatpush.msrb.mxu2 %v479_v5  ;;  %v1492_v5 = vld [vmem:[%s2125_s3 + $0x70] sm:$0xff] }
 0x18b   :  { %v615_v41 = vld [vmem:[#allocation2 + $0x1158] sm:$0xff]  ;;  %1417 = vmatpush.msrb.mxu1 %v559_v40 }
 0x18c   :  { %v391_v43 = vld [vmem:[#allocation2 + $0xa58] sm:$0xff]  ;;  %1439 = vmatpush.msrb.mxu3 %v615_v41 }
 0x18d   :  { %v475_v44 = vld [vmem:[#allocation2 + $0xcf8] sm:$0xff]  ;;  %1387 = vmatpush.msra.mxu0 %v391_v43  ;;  %v1507_v43 = vld [vmem:[%s2125_s3 + $0xe8] sm:$0xff] }
 0x18e   :  { %v555_v45 = vld [vmem:[#allocation2 + $0xf78] sm:$0xff]  ;;  %1402 = vmatpush.msrb.mxu2 %v475_v44 }
 0x18f   :  { %v611_v46 = vld [vmem:[#allocation2 + $0x1138] sm:$0xff]  ;;  %1418 = vmatpush.msrb.mxu1 %v555_v45  ;;  %v1506_v45 = vld [vmem:[%s2125_s3 + $0xe0] sm:$0xff] }
 0x190   :  { %v387_v47 = vld [vmem:[#allocation2 + $0xa38] sm:$0xff]  ;;  %1440 = vmatpush.msrb.mxu3 %v611_v46  ;;  %v752_v46 = vadd.f32 %v1885_v39, %v732_v51  ;;  %v1516_v51 = vld [vmem:[%s2125_s3 + $0x130] sm:$0xff] }
 0x191   :  { %v471_v20 = vld [vmem:[#allocation2 + $0xcd8] sm:$0xff]  ;;  %1388 = vmatpush.msra.mxu0 %v387_v47  ;;  %v951_v47 = vpop.f32.mrf.mxu0 }
 0x192   :  { %v551_v21 = vld [vmem:[#allocation2 + $0xf58] sm:$0xff]  ;;  %1403 = vmatpush.msrb.mxu2 %v471_v20  ;;  %v1490_v20 = vld [vmem:[%s2125_s3 + $0x60] sm:$0xff] }
 0x193   :  { %v607_v4 = vld [vmem:[#allocation2 + $0x1118] sm:$0xff]  ;;  %1419 = vmatpush.msrb.mxu1 %v551_v21 }
 0x194   :  { %v383_v59 = vld [vmem:[#allocation2 + $0xa18] sm:$0xff]  ;;  %1441 = vmatpush.msrb.mxu3 %v607_v4 }
 0x195   :  { %v467_v26 = vld [vmem:[#allocation2 + $0xcb8] sm:$0xff]  ;;  %1389 = vmatpush.msra.mxu0 %v383_v59  ;;  %v971_v59 = vpop.f32.mrf.mxu2 }
 0x196   :  { %v547_v53 = vld [vmem:[#allocation2 + $0xf38] sm:$0xff]  ;;  %1404 = vmatpush.msrb.mxu2 %v467_v26  ;;  %1390 = vmatmul.f32.vlgmr.msra.gmra.mxu0 %v1843_v58  ;;  %v1904_v58 = vpop.f32.mrf.mxu1 }
 0x197   :  { %v603_v54 = vld [vmem:[#allocation2 + $0x10f8] sm:$0xff]  ;;  %1420 = vmatpush.msrb.mxu1 %v547_v53  ;;  %v1504_v53 = vld [vmem:[%s2125_s3 + $0xd0] sm:$0xff] }
 0x198   :  { %v659_v50 = vld [vmem:[#allocation2 + $0x12b8] sm:$0xff]  ;;  %1442 = vmatpush.msrb.mxu3 %v603_v54  ;;  %v772_v54 = vadd.f32 %v1897_v60, %v752_v46  ;;  %v1523_v60 = vld [vmem:[%s2125_s3 + $0x168] sm:$0xff] }
 0x199   :  { %v463_v56 = vld [vmem:[#allocation2 + $0xc98] sm:$0xff]  ;;  %1464 = vmatpush.msrb.mxu0 %v659_v50  ;;  %v1488_v50 = vld [vmem:[%s2125_s3 + $0x50] sm:$0xff] }
 0x19a   :  { %v543_v12 = vld [vmem:[#allocation2 + $0xf18] sm:$0xff]  ;;  %1405 = vmatpush.msrb.mxu2 %v463_v56  ;;  %v1503_v56 = vld [vmem:[%s2125_s3 + $0xc8] sm:$0xff] }
 0x19b   :  { %v599_v62 = vld [vmem:[#allocation2 + $0x10d8] sm:$0xff]  ;;  %1421 = vmatpush.msrb.mxu1 %v543_v12  ;;  %v1487_v12 = vld [vmem:[%s2125_s3 + $0x48] sm:$0xff] }
 0x19c   :  { %v655_v63 = vld [vmem:[#allocation2 + $0x1298] sm:$0xff]  ;;  %1443 = vmatpush.msrb.mxu3 %v599_v62  ;;  %v792_v62 = vadd.f32 %v1890_v48, %v772_v54 }
 0x19d   :  { %v459_v1 = vld [vmem:[#allocation2 + $0xc78] sm:$0xff]  ;;  %1465 = vmatpush.msrb.mxu0 %v655_v63  ;;  %v991_v63 = vpop.f32.mrf.mxu3 }
 0x19e   :  { %v539_v2 = vld [vmem:[#allocation2 + $0xef8] sm:$0xff]  ;;  %1406 = vmatpush.msrb.mxu2 %v459_v1  ;;  %v931_v38 = vpop.f32.mrf.mxu1  ;;  %v1486_v1 = vld [vmem:[%s2125_s3 + $0x40] sm:$0xff]  ;;  %v812_v11 = vadd.f32 %v1892_v49, %v792_v62  ;;  %v1483_v49 = vld [vmem:[%s2125_s3 + $0x28] sm:$0xff] }
 0x19f   :  { %v595_v3 = vld [vmem:[#allocation2 + $0x10b8] sm:$0xff]  ;;  %1422 = vmatpush.msrb.mxu1 %v539_v2 }
 0x1a0   :  { %v651_v6 = vld [vmem:[#allocation2 + $0x1278] sm:$0xff]  ;;  %1444 = vmatpush.msrb.mxu3 %v595_v3  ;;  %v1522_v3 = vld [vmem:[%s2125_s3 + $0x160] sm:$0xff] }
 0x1a1   :  { %v455_v15 = vld [vmem:[#allocation2 + $0xc58] sm:$0xff]  ;;  %1466 = vmatpush.msrb.mxu0 %v651_v6  ;;  %v1051_v6 = vpop.f32.mrf.mxu2 }
 0x1a2   :  { %v535_v10 = vld [vmem:[#allocation2 + $0xed8] sm:$0xff]  ;;  %1407 = vmatpush.msrb.mxu2 %v455_v15  ;;  %v1500_v15 = vld [vmem:[%s2125_s3 + $0xb0] sm:$0xff] }
 0x1a3   :  { %v591_v14 = vld [vmem:[#allocation2 + $0x1098] sm:$0xff]  ;;  %1423 = vmatpush.msrb.mxu1 %v535_v10 }
 0x1a4   :  { %v647_v16 = vld [vmem:[#allocation2 + $0x1258] sm:$0xff]  ;;  %1445 = vmatpush.msrb.mxu3 %v591_v14  ;;  %v1484_v14 = vld [vmem:[%s2125_s3 + $0x30] sm:$0xff] }
 0x1a5   :  { %v451_v18 = vld [vmem:[#allocation2 + $0xc38] sm:$0xff]  ;;  %1467 = vmatpush.msrb.mxu0 %v647_v16  ;;  %v1499_v16 = vld [vmem:[%s2125_s3 + $0xa8] sm:$0xff] }
 0x1a6   :  { %v531_v19 = vld [vmem:[#allocation2 + $0xeb8] sm:$0xff]  ;;  %1408 = vmatpush.msrb.mxu2 %v451_v18  ;;  %v1011_v13 = vpop.f32.mrf.mxu1  ;;  %v1520_v18 = vld [vmem:[%s2125_s3 + $0x150] sm:$0xff] }
 0x1a7   :  { %v587_v22 = vld [vmem:[#allocation2 + $0x1078] sm:$0xff]  ;;  %1424 = vmatpush.msrb.mxu1 %v531_v19  ;;  %v1031_v19 = vpop.f32.mrf.mxu0 }
 0x1a8   :  { %v643_v23 = vld [vmem:[#allocation2 + $0x1238] sm:$0xff]  ;;  %1446 = vmatpush.msrb.mxu3 %v587_v22 }
 0x1a9   :  { %v447_v25 = vld [vmem:[#allocation2 + $0xc18] sm:$0xff]  ;;  %1468 = vmatpush.msrb.mxu0 %v643_v23  ;;  %v1498_v23 = vld [vmem:[%s2125_s3 + $0xa0] sm:$0xff] }
 0x1aa   :  { %v527_v27 = vld [vmem:[#allocation2 + $0xe98] sm:$0xff]  ;;  %1409 = vmatpush.msrb.mxu2 %v447_v25  ;;  %v832_v25 = vadd.f32 %v1899_v61, %v812_v11 }
 0x1ab   :  { %v583_v31 = vld [vmem:[#allocation2 + $0x1058] sm:$0xff]  ;;  %1425 = vmatpush.msrb.mxu1 %v527_v27  ;;  %1410 = vmatmul.f32.vlgmr.msrb.gmra.mxu2 %v1855_v55  ;;  %v932_v55 = vadd.f32 %v931_v38, %v912_v36  ;;  %v1482_v27 = vld [vmem:[%s2125_s3 + $0x20] sm:$0xff] }
 0x1ac   :  { %v639_v32 = vld [vmem:[#allocation2 + $0x1218] sm:$0xff]  ;;  %1447 = vmatpush.msrb.mxu3 %v583_v31  ;;  %v1518_v31 = vld [vmem:[%s2125_s3 + $0x140] sm:$0xff] }
 0x1ad   :  { %v1509_v34 = vld [vmem:[%s2125_s3 + $0xf8] sm:$0xff]  ;;  %1469 = vmatpush.msrb.mxu0 %v639_v32  ;;  %v952_v26 = vadd.f32 %v951_v47, %v932_v55  ;;  %v852_v32 = vadd.f32 %v1907_v29, %v832_v25  ;;  %v1480_v29 = vld [vmem:[%s2125_s3 + $0x10] sm:$0xff]  ;;  %v1514_v55 = vld [vmem:[%s2125_s3 + $0x120] sm:$0xff]  ;;  %v665_v25 = vperm.slane %v1894_v52, 3 }
 0x1ae   :  { %v1493_v35 = vld [vmem:[%s2125_s3 + $0x78] sm:$0xff]  ;;  %1636 = vmatmul.msk.f32.vlgmr.msrb.gmra.mxu0 %vm670_vm0, %v1867_v8  ;;  %v1524_v8 = vld [vmem:[%s2125_s3 + $0x170] sm:$0xff]  ;;  %v1091_v46 = vpop.f32.mrf.mxu1 }
 0x1af   :  { %v523_v42 = vld [vmem:[#allocation2 + $0xe78] sm:$0xff]  ;;  %1566 = vmatpush.msra.mxu0 %v1509_v34  ;;  %1546 = vmatpush.msra.mxu2 %v1493_v35  ;;  %v972_v57 = vadd.f32 %v971_v59, %v952_v26  ;;  %v1071_v34 = vpop.f32.mrf.mxu2  ;;  %v872_v38 = vadd.f32 %v1904_v58, %v852_v32  ;;  %v1478_v58 = vld [vmem:[%s2125_s3] sm:$0xff]  ;;  %v1512_v47 = vld [vmem:[%s2125_s3 + $0x110] sm:$0xff]  ;;  %v1111_v59 = vpop.f32.mrf.mxu3 }
 0x1b0   :  { %v579_v37 = vld [vmem:[#allocation2 + $0x1038] sm:$0xff]  ;;  %1426 = vmatpush.msrb.mxu1 %v523_v42  ;;  %v1496_v42 = vld [vmem:[%s2125_s3 + $0x90] sm:$0xff]  ;;  %v1131_v26 = vpop.f32.mrf.mxu0 }
 0x1b1   :  { %v519_v40 = vld [vmem:[#allocation2 + $0xe58] sm:$0xff]  ;;  %1448 = vmatpush.msrb.mxu3 %v579_v37  ;;  %1567 = vmatpush.msra.mxu0 %v1508_v7  ;;  %v992_v9 = vadd.f32 %v991_v63, %v972_v57  ;;  %v1495_v7 = vld [vmem:[%s2125_s3 + $0x88] sm:$0xff] }
 0x1b2   :  { %v575_v41 = vld [vmem:[#allocation2 + $0x1018] sm:$0xff]  ;;  %1547 = vmatpush.msra.mxu2 %v1492_v5  ;;  %1427 = vmatpush.msrb.mxu1 %v519_v40  ;;  %v1479_v5 = vld [vmem:[%s2125_s3 + $0x8] sm:$0xff]  ;;  %v1494_v40 = vld [vmem:[%s2125_s3 + $0x80] sm:$0xff] }
 0x1b3   :  { %v515_v44 = vld [vmem:[#allocation2 + $0xe38] sm:$0xff]  ;;  %1449 = vmatpush.msrb.mxu3 %v575_v41  ;;  %1568 = vmatpush.msra.mxu0 %v1507_v43  ;;  %v1012_v22 = vadd.f32 %v1011_v13, %v992_v9  ;;  %v1515_v41 = vld [vmem:[%s2125_s3 + $0x128] sm:$0xff]  ;;  %v1540_v9 = vld [vmem:[%s2125_s3 + $0x1f0] sm:$0xff] }
 0x1b4   :  { %1450 = vmatmul.f32.vlgmr.msrb.gmra.mxu3 %v1874_v17  ;;  %1548 = vmatpush.msra.mxu2 %v1491_v33  ;;  %v511_v21 = vld [vmem:[#allocation2 + $0xe18] sm:$0xff]  ;;  %v1474_v33 = vmax.f32 %v872_v38, 0.0  ;;  %v1536_v13 = vld [vmem:[%s2125_s3 + $0x1d0] sm:$0xff] }
 0x1b5   :  { %v1505_v4 = vld [vmem:[%s2125_s3 + $0xd8] sm:$0xff]  ;;  %1428 = vmatpush.msrb.mxu1 %v515_v44  ;;  %1569 = vmatpush.msra.mxu0 %v1506_v45  ;;  %v1032_v28 = vadd.f32 %v1031_v19, %v1012_v22  ;;  %v664_v45 = vperm.slane %v1894_v52, 2  ;;  %v1532_v19 = vld [vmem:[%s2125_s3 + $0x1b0] sm:$0xff]  ;;  %v1530_v22 = vld [vmem:[%s2125_s3 + $0x1a0] sm:$0xff] }
 0x1b6   :  { %v1489_v39 = vld [vmem:[%s2125_s3 + $0x58] sm:$0xff]  ;;  %1549 = vmatpush.msra.mxu2 %v1490_v20  ;;  %v1511_v20 = vld [vmem:[%s2125_s3 + $0x108] sm:$0xff] }
 0x1b7   :  { %v1525_v17 = vld [vmem:[%s2125_s3 + $0x178] sm:$0xff]  ;;  %1429 = vmatpush.msrb.mxu1 %v511_v21  ;;  %1570 = vmatpush.msra.mxu0 %v1505_v4  ;;  %v1052_v35 = vadd.f32 %v1051_v6, %v1032_v28  ;;  %v1510_v21 = vld [vmem:[%s2125_s3 + $0x100] sm:$0xff]  ;;  %v1092_v4 = vadd.f32 %v1091_v46, %v664_v45  ;;  %v1527_v28 = vld [vmem:[%s2125_s3 + $0x188] sm:$0xff] }
 0x1b8   :  { %1430 = vmatmul.f32.vlgmr.msrb.gmra.mxu1 %v1861_v0  ;;  %1550 = vmatpush.msra.mxu2 %v1489_v39  ;;  %v1502_v0 = vld [vmem:[%s2125_s3 + $0xc0] sm:$0xff]  ;;  %v1501_v2 = vld [vmem:[%s2125_s3 + $0xb8] sm:$0xff] }
 0x1b9   :  { %1571 = vmatpush.msra.mxu0 %v1504_v53  ;;  %1586 = vmatpush.msra.mxu1 %v1525_v17  ;;  %v1485_v48 = vld [vmem:[%s2125_s3 + $0x38] sm:$0xff]  ;;  %v1072_v37 = vadd.f32 %v1071_v34, %v1052_v35  ;;  %v1112_v39 = vadd.f32 %v1111_v59, %v1092_v4  ;;  %v1151_v53 = vpop.f32.mrf.mxu2 }
 0x1ba   :  { %1551 = vmatpush.msra.mxu2 %v1488_v50  ;;  %v1521_v10 = vld [vmem:[%s2125_s3 + $0x158] sm:$0xff]  ;;  %v1171_v50 = vpop.f32.mrf.mxu1 }
 0x1bb   :  { %1572 = vmatpush.msra.mxu0 %v1503_v56  ;;  %1587 = vmatpush.msra.mxu1 %v1524_v8  ;;  %v1497_v30 = vld [vmem:[%s2125_s3 + $0x98] sm:$0xff]  ;;  %v1475_v43 = vmax.f32 %v1072_v37, 0.0  ;;  %v1132_v17 = vadd.f32 %v1131_v26, %v1112_v39  ;;  %v1191_v8 = vpop.f32.mrf.mxu3 }
 0x1bc   :  { %1552 = vmatpush.msra.mxu2 %v1487_v12  ;;  %v1481_v61 = vld [vmem:[%s2125_s3 + $0x18] sm:$0xff] }
 0x1bd   :  { %1573 = vmatpush.msra.mxu0 %v1502_v0  ;;  %1588 = vmatpush.msra.mxu1 %v1523_v60  ;;  %v1517_v36 = vld [vmem:[%s2125_s3 + $0x138] sm:$0xff]  ;;  %v1152_v54 = vadd.f32 %v1151_v53, %v1132_v17 }
 0x1be   :  { %1553 = vmatpush.msra.mxu2 %v1486_v1  ;;  %v1513_v44 = vld [vmem:[%s2125_s3 + $0x118] sm:$0xff] }
 0x1bf   :  { %1574 = vmatpush.msra.mxu0 %v1501_v2  ;;  %1589 = vmatpush.msra.mxu1 %v1522_v3  ;;  %v1172_v56 = vadd.f32 %v1171_v50, %v1152_v54  ;;  %v1537_v11 = vld [vmem:[%s2125_s3 + $0x1d8] sm:$0xff] }
 0x1c0   :  { %1554 = vmatpush.msra.mxu2 %v1485_v48  ;;  %v1541_v48 = vld [vmem:[%s2125_s3 + $0x1f8] sm:$0xff] }
 0x1c1   :  { %1575 = vmatpush.msra.mxu0 %v1500_v15  ;;  %1590 = vmatpush.msra.mxu1 %v1521_v10  ;;  %v1192_v57 = vadd.f32 %v1191_v8, %v1172_v56  ;;  %v1539_v15 = vld [vmem:[%s2125_s3 + $0x1e8] sm:$0xff]  ;;  %v1538_v10 = vld [vmem:[%s2125_s3 + $0x1e0] sm:$0xff] }
 0x1c2   :  { %1555 = vmatpush.msra.mxu2 %v1484_v14  ;;  %1606 = vmatpush.msra.mxu3 %v1541_v48  ;;  %v1535_v14 = vld [vmem:[%s2125_s3 + $0x1c8] sm:$0xff] }
 0x1c3   :  { %1576 = vmatpush.msra.mxu0 %v1499_v16  ;;  %1591 = vmatpush.msra.mxu1 %v1520_v18  ;;  %v1271_v2 = vpop.f32.mrf.mxu3  ;;  %v1534_v16 = vld [vmem:[%s2125_s3 + $0x1c0] sm:$0xff]  ;;  %v1533_v18 = vld [vmem:[%s2125_s3 + $0x1b8] sm:$0xff] }
 0x1c4   :  { %1556 = vmatpush.msra.mxu2 %v1483_v49  ;;  %1607 = vmatpush.msra.mxu3 %v1540_v9  ;;  %v1531_v49 = vld [vmem:[%s2125_s3 + $0x1a8] sm:$0xff] }
 0x1c5   :  { %1577 = vmatpush.msra.mxu0 %v1498_v23  ;;  %1592 = vmatpush.msra.mxu1 %v1519_v24  ;;  %v1529_v23 = vld [vmem:[%s2125_s3 + $0x198] sm:$0xff]  ;;  %v1528_v24 = vld [vmem:[%s2125_s3 + $0x190] sm:$0xff] }
 0x1c6   :  { %1557 = vmatpush.msra.mxu2 %v1482_v27  ;;  %1608 = vmatpush.msra.mxu3 %v1539_v15 }
 0x1c7   :  { %1578 = vmatpush.msra.mxu0 %v1497_v30  ;;  %1593 = vmatpush.msra.mxu1 %v1518_v31  ;;  %v1526_v30 = vld [vmem:[%s2125_s3 + $0x180] sm:$0xff] }
 0x1c8   :  { %1558 = vmatpush.msra.mxu2 %v1481_v61  ;;  %v1211_v12 = vpop.f32.mrf.mxu0  ;;  %1609 = vmatpush.msra.mxu3 %v1538_v10 }
 0x1c9   :  { %1579 = vmatpush.msra.mxu0 %v1496_v42  ;;  %1594 = vmatpush.msra.mxu1 %v1517_v36  ;;  %v1212_v0 = vadd.f32 %v1211_v12, %v1192_v57 }
 0x1ca   :  { %1559 = vmatpush.msra.mxu2 %v1480_v29  ;;  %1610 = vmatpush.msra.mxu3 %v1537_v11 }
 0x1cb   :  { %1580 = vmatpush.msra.mxu0 %v1495_v7  ;;  %1595 = vmatpush.msra.mxu1 %v1516_v51 }
 0x1cc   :  { %1560 = vmatpush.msra.mxu2 %v1479_v5  ;;  %1611 = vmatpush.msra.mxu3 %v1536_v13 }
 0x1cd   :  { %1581 = vmatpush.msra.mxu0 %v1494_v40  ;;  %1596 = vmatpush.msra.mxu1 %v1515_v41 }
 0x1ce   :  { %1561 = vmatpush.msra.mxu2 %v1478_v58  ;;  %1582 = vmatmul.f32.vlgmr.msra.gmra.mxu0 %v1475_v43 }
 0x1cf   :  { %1562 = vmatmul.f32.vlgmr.msra.gmra.mxu2 %v1474_v33  ;;  %1597 = vmatpush.msra.mxu1 %v1514_v55 }
 0x1d0   :  { %1612 = vmatpush.msra.mxu3 %v1535_v14 }
 0x1d1   :  { %1598 = vmatpush.msra.mxu1 %v1513_v44  ;;  %v1641_v44 = vld [vmem:[%s2126_s4] ss:$0 sm:$0xff] }
 0x1d2   :  { %1613 = vmatpush.msra.mxu3 %v1534_v16 }
 0x1d3   :  { %1599 = vmatpush.msra.mxu1 %v1512_v47 }
 0x1d4   :  { %1614 = vmatpush.msra.mxu3 %v1533_v18 }
 0x1d5   :  { %1600 = vmatpush.msra.mxu1 %v1511_v20 }
 0x1d6   :  { %1615 = vmatpush.msra.mxu3 %v1532_v19 }
 0x1d7   :  { %1601 = vmatpush.msra.mxu1 %v1510_v21 }
 0x1d8   :  { %v1231_v60 = vpop.f32.mrf.mxu2  ;;  %1616 = vmatpush.msra.mxu3 %v1531_v49 }
 0x1d9   :  { %v1232_v62 = vadd.f32 %v1231_v60, %v1212_v0 }
 0x1da   :  { %v1251_v63 = vpop.f32.mrf.mxu1  ;;  %1617 = vmatpush.msra.mxu3 %v1530_v22 }
 0x1db   :  { %v1252_v1 = vadd.f32 %v1251_v63, %v1232_v62 }
 0x1dc   :  { %1618 = vmatpush.msra.mxu3 %v1529_v23 }
 0x1dd   :  { %v1272_v3 = vadd.f32 %v1271_v2, %v1252_v1 }
 0x1de   :  { %1619 = vmatpush.msra.mxu3 %v1528_v24 }
 0x1df   :  { %v1476_v6 = vmax.f32 %v1272_v3, 0.0 }
 0x1e0   :  { %1620 = vmatpush.msra.mxu3 %v1527_v28 }
 0x1e1   :  { %1602 = vmatmul.f32.vlgmr.msra.gmra.mxu1 %v1476_v6 }
 0x1e2   :  { %1621 = vmatpush.msra.mxu3 %v1526_v30 }
 0x1f6   :  { %v1291_v27 = vpop.f32.mrf.mxu3 }
 0x1f7   :  { %v1292_v31 = vadd.f32 %v1291_v27, %v665_v25 }
 0x1fb   :  { %v1311_v32 = vpop.f32.mrf.mxu0 }
 0x1fc   :  { %v1312_v34 = vadd.f32 %v1311_v32, %v1292_v31  ;;  %v1331_v61 = vpop.f32.mrf.mxu2 }
 0x1fd   :  { %v1351_v42 = vpop.f32.mrf.mxu1 }
 0x1fe   :  { %v1332_v35 = vadd.f32 %v1331_v61, %v1312_v34 }
 0x200   :  { %v1352_v36 = vadd.f32 %v1351_v42, %v1332_v35  ;;  %v1371_v52 = vpop.f32.mrf.mxu3 }
 0x202   :  { %v1372_v29 = vadd.f32 %v1371_v52, %v1352_v36 }
 0x213   :  { %v1391_v37 = vpop.f32.mrf.mxu0 }
 0x214   :  { %v1392_v7 = vadd.f32 %v1391_v37, %v1372_v29 }
 0x22b   :  { %v1471_v58 = vpop.f32.mrf.mxu0 }
 0x22e   :  { %v1411_v51 = vpop.f32.mrf.mxu2 }
 0x22f   :  { %v1412_v38 = vadd.f32 %v1411_v51, %v1392_v7 }
 0x235   :  { %v1431_v5 = vpop.f32.mrf.mxu1 }
 0x236   :  { %v1432_v40 = vadd.f32 %v1431_v5, %v1412_v38 }
 0x237   :  { %v1451_v41 = vpop.f32.mrf.mxu3 }
 0x238   :  { %v1452_v43 = vadd.f32 %v1451_v41, %v1432_v40 }
 0x23a   :  { %v1472_v33 = vadd.f32 %v1471_v58, %v1452_v43 }
 0x23c   :  { %v1477_v55 = vmax.f32 %v1472_v33, 0.0 }
 0x23e   :  { %1622 = vmatmul.f32.vlgmr.msra.gmra.mxu3 %v1477_v55 }
 0x24b   :  { %v1583_v47 = vpop.f32.mrf.mxu0 }
 0x252   :  { %v1563_v45 = vpop.f32.mrf.mxu2 }
 0x253   :  { %v1564_v46 = vadd.f32 %v1641_v44, %v1563_v45 }
 0x255   :  { %v1584_v21 = vadd.f32 %v1583_v47, %v1564_v46 }
 0x25e   :  { %v1603_v20 = vpop.f32.mrf.mxu1 }
 0x25f   :  { %v1604_v4 = vadd.f32 %v1603_v20, %v1584_v21 }
 0x2c1   :  { %v1623_v59 = vpop.f32.mrf.mxu3 }
 0x2c2   :  { %v1624_v39 = vadd.f32 %v1623_v59, %v1604_v4 }
 0x2c4   :  { %1626 = vst [vmem:[%s2127_s5] sm:$0xff] %v1624_v39 }
 0x2c5   :  { %1631 = vsyncpa [#allocation3], 1 }
 0x2c6   :  { %1632 = vsyncpa [#allocation5], 1 }

</bundles_post_ra>
